<compile_context>
chip_gen: v6e
topology: v6e:2x2x1
jax: 0.10.0
libtpu: 0.0.40
codegen_flags: <defaults>
</compile_context>

<pallas_src>
import functools

import jax
import jax.numpy as jnp
from jax.experimental import pallas as pl
from jax.experimental.pallas import tpu as pltpu

MOMENTUM = 0.1
ITERATIONS = 4
EPS = 1e-5
_LANE = 128


# ----------------------------------------------------------------------------
# Pass 1: per-batch statistics -> whitening matrix + blended mean.
# Grid (B, n_s_tiles); the S axis is "arbitrary" and accumulates into scratch.
# ----------------------------------------------------------------------------
def _stats_kernel(x_ref, rmean_ref, rcov_ref, wh_ref, m_ref,
                  sumx_sc, sumxx_sc, *,
                  seq_len, num_valid, iterations, momentum, cov_dtype):
    s = pl.program_id(1)
    n_s = pl.num_programs(1)

    @pl.when(s == 0)
    def _init():
        sumx_sc[...] = jnp.zeros_like(sumx_sc)
        sumxx_sc[...] = jnp.zeros_like(sumxx_sc)

    rmean = rmean_ref[...].astype(jnp.float32)                     # (1, Fp)
    # Shift by the running mean up front: improves conditioning of the raw
    # moments and makes the padded columns exactly zero.
    xc = x_ref[0].astype(jnp.float32) - rmean                      # (tS, Fp)
    sumx_sc[...] += jnp.sum(xc, axis=0, keepdims=True)

    xc_mm = xc.astype(cov_dtype)
    # Contract over the sequence axis directly: xc^T @ xc with no transpose op.
    sumxx_sc[...] += jax.lax.dot_general(
        xc_mm, xc_mm, (((0,), (0,)), ((), ())),
        preferred_element_type=jnp.float32)

    @pl.when(s == n_s - 1)
    def _finalize():
        Fp = wh_ref.shape[-1]
        sum_xc = sumx_sc[...]                                      # (1, Fp)
        # m = (1-mom)*rmean + mom*mean(x) = rmean + mom*mean(x - rmean)
        c = momentum * (sum_xc / float(seq_len))                   # (1, Fp)
        m = rmean + c

        def _outer(a, b):   # (1,Fp),(1,Fp) -> (Fp,Fp) = a^T @ b (no transpose)
            return jax.lax.dot_general(a, b, (((0,), (0,)), ((), ())),
                                       preferred_element_type=jnp.float32)

        # sum_s (xc_s - c)^T (xc_s - c)
        sigma = (sumxx_sc[...]
                 - _outer(c, sum_xc) - _outer(sum_xc, c)
                 + float(seq_len) * _outer(c, c))
        sigma = sigma / float(seq_len - 1)

        # Identity restricted to the first `num_valid` features: keeps the
        # zero-padded block exactly zero so trace / Newton-Schulz match the
        # unpadded computation.
        row = jax.lax.broadcasted_iota(jnp.int32, (Fp, Fp), 0)
        col = jax.lax.broadcasted_iota(jnp.int32, (Fp, Fp), 1)
        eye = jnp.where((row == col) & (row < num_valid), 1.0, 0.0)
        eye = eye.astype(jnp.float32)

        sigma = sigma + eye * EPS
        sigma = ((1.0 - momentum) * rcov_ref[...].astype(jnp.float32)
                 + momentum * sigma)

        # whiten_matrix() is abstract in the reference module; we use the
        # standard Newton-Schulz (IterNorm-style) iteration for sigma^{-1/2}.
        # TODO(synk): a concrete subclass may define a different whiten_matrix.
        trace = jnp.sum(sigma * eye)
        sigma_n = sigma / trace
        if iterations >= 1:
            # Peeled first iteration: p0 = I  =>  p1 = 0.5*(3I - sigma_n).
            p = 0.5 * (3.0 * eye - sigma_n)
            for _ in range(iterations - 1):
                p2 = jnp.dot(p, p, preferred_element_type=jnp.float32)
                p3 = jnp.dot(p2, p, preferred_element_type=jnp.float32)
                p = 0.5 * (3.0 * p - jnp.dot(p3, sigma_n,
                                             preferred_element_type=jnp.float32))
        else:
            p = eye
        wh = p * jax.lax.rsqrt(trace)                              # ~ sigma^{-1/2}

        wh_ref[0] = wh.astype(wh_ref.dtype)
        m_ref[0] = m.astype(m_ref.dtype)


# ----------------------------------------------------------------------------
# Pass 2: apply the whitening matrix per (batch, S-tile).  Fully parallel grid,
# lane-dense (Fp-wide) output stores, bf16 MXU inputs / f32 accumulation.
# ----------------------------------------------------------------------------
def _apply_kernel(x_ref, m_ref, wh_ref, o_ref, *, matmul_dtype):
    xn = x_ref[0].astype(jnp.float32) - m_ref[0].astype(jnp.float32)   # (tS, Fp)
    out = jnp.dot(xn.astype(matmul_dtype),
                  wh_ref[0].astype(matmul_dtype),
                  preferred_element_type=jnp.float32)
    o_ref[0] = out.astype(o_ref.dtype)


# ----------------------------------------------------------------------------
# Helpers
# ----------------------------------------------------------------------------
def _pick_tile_s(S, cap=512):
    """Largest multiple-of-8 divisor of S that is <= cap (falls back to S)."""
    if S <= cap:
        return S
    for t in range(cap - cap % 8, 7, -8):
        if S % t == 0:
            return t
    return S


def _padded_bytes(shape, dtype=jnp.float32):
    s = list(shape)
    s[-1] = -(-s[-1] // _LANE) * _LANE
    if len(s) >= 2:
        s[-2] = -(-s[-2] // 8) * 8
    n = 1
    for d in s:
        n *= d
    return n * jnp.dtype(dtype).itemsize


def whitening2d_forward(x, running_mean, running_covariance, *,
                        iterations=ITERATIONS, momentum=MOMENTUM,
                        matmul_dtype=jnp.bfloat16, cov_dtype=jnp.float32,
                        tile_s=None):
    """Eval-path Whitening2d. x: (B, S, F). Returns decorrelated (B, S, F)."""
    B, S, F = x.shape
    assert S >= 2, "forward divides by (S - 1); S must be >= 2"

    Fp = max(_LANE, -(-F // _LANE) * _LANE)          # lane-dense feature axis
    if tile_s is None:
        tile_s = _pick_tile_s(S)
    if S % tile_s != 0 or (tile_s % 8 != 0 and tile_s != S):
        raise ValueError(f"tile_s={tile_s} must divide S={S} and be a multiple of 8")
    n_s = S // tile_s

    f32 = jnp.float32
    x_p = jnp.pad(x.astype(f32), ((0, 0), (0, 0), (0, Fp - F)))
    rmean_p = jnp.pad(running_mean.astype(f32), (0, Fp - F)).reshape(1, Fp)
    rcov_p = jnp.pad(running_covariance.astype(f32),
                     ((0, Fp - F), (0, Fp - F)))

    # --- VMEM budget: actual block footprint (double-buffered) + headroom ----
    blk_x = _padded_bytes((tile_s, Fp))
    blk_cov = _padded_bytes((Fp, Fp))
    blk_vec = _padded_bytes((1, Fp))
    pass1 = (2 * (blk_x + blk_vec + blk_cov)        # inputs, double-buffered
             + 2 * (blk_cov + blk_vec)              # outputs (wh, m)
             + (blk_vec + blk_cov)                  # scratch accumulators
             + 10 * blk_cov)                        # Newton-Schulz temporaries
    pass2 = 2 * (blk_x + blk_vec + blk_cov) + 2 * blk_x
    vmem_limit = int(min(64 * 2**20, max(8 * 2**20, 2 * max(pass1, pass2))))

    # ------------------------------ pass 1 ----------------------------------
    stats = functools.partial(
        _stats_kernel, seq_len=S, num_valid=F,
        iterations=iterations, momentum=momentum, cov_dtype=cov_dtype)
    wh, m = pl.pallas_call(
        stats,
        out_shape=(jax.ShapeDtypeStruct((B, Fp, Fp), f32),
                   jax.ShapeDtypeStruct((B, 1, Fp), f32)),
        grid_spec=pltpu.PrefetchScalarGridSpec(
            num_scalar_prefetch=0,
            grid=(B, n_s),
            in_specs=[
                pl.BlockSpec((1, tile_s, Fp), lambda b, s: (b, s, 0)),
                # NOTE: constant-index broadcast inputs; for very large F these
                # could use pipeline_mode=pl.Buffered(1) to skip double-buffering.
                pl.BlockSpec((1, Fp), lambda b, s: (0, 0)),
                pl.BlockSpec((Fp, Fp), lambda b, s: (0, 0)),
            ],
            out_specs=[
                pl.BlockSpec((1, Fp, Fp), lambda b, s: (b, 0, 0)),
                pl.BlockSpec((1, 1, Fp), lambda b, s: (b, 0, 0)),
            ],
            scratch_shapes=[
                pltpu.VMEM((1, Fp), jnp.float32),
                pltpu.VMEM((Fp, Fp), jnp.float32),
            ]),
        compiler_params=pltpu.CompilerParams(
            dimension_semantics=("parallel", "arbitrary"),
            vmem_limit_bytes=vmem_limit),
    )(x_p, rmean_p, rcov_p)

    # ------------------------------ pass 2 ----------------------------------
    apply_k = functools.partial(_apply_kernel, matmul_dtype=matmul_dtype)
    out_p = pl.pallas_call(
        apply_k,
        out_shape=jax.ShapeDtypeStruct((B, S, Fp), x.dtype),
        grid_spec=pltpu.PrefetchScalarGridSpec(
            num_scalar_prefetch=0,
            grid=(B, n_s),
            in_specs=[
                pl.BlockSpec((1, tile_s, Fp), lambda b, s: (b, s, 0)),
                pl.BlockSpec((1, 1, Fp), lambda b, s: (b, 0, 0)),
                pl.BlockSpec((1, Fp, Fp), lambda b, s: (b, 0, 0)),
            ],
            out_specs=pl.BlockSpec((1, tile_s, Fp), lambda b, s: (b, s, 0))),
        compiler_params=pltpu.CompilerParams(
            dimension_semantics=("parallel", "parallel"),
            vmem_limit_bytes=vmem_limit),
    )(x_p, m, wh)

    return out_p[..., :F]


# ----------------------------------------------------------------------------
# Pure-JAX reference of the same math (eval path), f32 / highest precision.
# ----------------------------------------------------------------------------
def _reference_forward(x, running_mean, running_covariance,
                       iterations=ITERATIONS, momentum=MOMENTUM):
    B, S, F = x.shape
    hp = jax.lax.Precision.HIGHEST
    m = (1.0 - momentum) * running_mean[None, None, :] + \
        momentum * jnp.mean(x, axis=1, keepdims=True)
    xn = x - m
    eye = jnp.eye(F, dtype=jnp.float32)
    sigma = jnp.einsum("bsf,bsg->bfg", xn, xn, precision=hp) / (S - 1) + eye * EPS
    sigma = (1.0 - momentum) * running_covariance[None] + momentum * sigma
    trace = jnp.trace(sigma, axis1=-2, axis2=-1)[:, None, None]
    sigma_n = sigma / trace
    p = jnp.broadcast_to(eye, sigma.shape)
    for _ in range(iterations):
        p3 = jnp.matmul(jnp.matmul(p, p, precision=hp), p, precision=hp)
        p = 0.5 * (3.0 * p - jnp.matmul(p3, sigma_n, precision=hp))
    wh = p / jnp.sqrt(trace)
    return jnp.einsum("bsf,bfg->bsg", xn, wh, precision=hp)


if __name__ == "__main__":
    B, S, F = 2, 64, 32   # (batch, seq, feats) — small, exercises S-tiling

    key = jax.random.PRNGKey(0)
    x = jax.random.normal(key, (B, S, F), dtype=jnp.float32)

    # Deterministic buffer/parameter init, exactly as reset_parameters():
    num_features = F
    weight = jnp.ones((num_features,), jnp.float32)            # affine (unused in forward)
    bias = jnp.zeros((num_features,), jnp.float32)             # affine (unused in forward)
    running_mean = jnp.zeros((num_features,), jnp.float32)
    running_covariance = jnp.ones((num_features, num_features), jnp.float32)  # .fill_(1)
    running_whitening = jnp.ones((num_features, num_features), jnp.float32)   # .fill_(1), unused here

    ref = _reference_forward(x, running_mean, running_covariance)

    # Exact-precision path (f32 MXU matmuls everywhere): tight check.
    out_f32 = whitening2d_forward(x, running_mean, running_covariance,
                                  matmul_dtype=jnp.float32,
                                  cov_dtype=jnp.float32, tile_s=16)
    out_f32 = jax.block_until_ready(out_f32)
    assert out_f32.shape == (B, S, F)
    assert jnp.allclose(out_f32, ref, atol=2e-3, rtol=2e-3), "f32 kernel mismatch"

    # Optimized path: bf16 MXU inputs / f32 accumulation for the large matmuls.
    out_opt = whitening2d_forward(x, running_mean, running_covariance,
                                  matmul_dtype=jnp.bfloat16,
                                  cov_dtype=jnp.bfloat16, tile_s=16)
    out_opt = jax.block_until_ready(out_opt)
    assert out_opt.shape == (B, S, F)
    assert jnp.allclose(out_opt, ref, atol=5e-2, rtol=5e-2), "bf16 kernel mismatch"

    print("KERNEL_OK")
</pallas_src>

<mosaic_0001>
module attributes {stable_mosaic.version = 11 : i64} {
  func.func @_stats_kernel(%arg0: i32, %arg1: i32, %arg2: memref<1x16x128xf32, #tpu.memory_space<vmem>>, %arg3: memref<1x128xf32, #tpu.memory_space<vmem>>, %arg4: memref<128x128xf32, #tpu.memory_space<vmem>>, %arg5: memref<1x128x128xf32, #tpu.memory_space<vmem>>, %arg6: memref<1x1x128xf32, #tpu.memory_space<vmem>>, %arg7: memref<1x128xf32, #tpu.memory_space<vmem>>, %arg8: memref<128x128xf32, #tpu.memory_space<vmem>>) attributes {dimension_semantics = [#tpu.dimension_semantics<parallel>, #tpu.dimension_semantics<arbitrary>], iteration_bounds = array<i64: 2, 4>, scalar_prefetch = 0 : i64, scratch_operands = 2 : i64, tpu.core_type = #tpu.core_type<tc>, window_params = [{transform_indices = @transform_0, window_bounds = array<i64: 1, 16, 128>}, {pipeline_mode = #tpu.pipeline_mode<synchronous>, transform_indices = @transform_1, window_bounds = array<i64: 1, 128>}, {pipeline_mode = #tpu.pipeline_mode<synchronous>, transform_indices = @transform_2, window_bounds = array<i64: 128, 128>}, {transform_indices = @transform_3, window_bounds = array<i64: 1, 128, 128>}, {transform_indices = @transform_4, window_bounds = array<i64: 1, 1, 128>}]} {
    %c0_i32 = arith.constant 0 : i32
    %0 = arith.cmpi eq, %arg1, %c0_i32 : i32
    %1 = arith.extui %0 : i1 to i32
    %c0_i32_0 = arith.constant 0 : i32
    %2 = arith.cmpi ne, %1, %c0_i32_0 : i32
    scf.if %2 {
      %cst_15 = arith.constant 0.000000e+00 : f32
      %20 = vector.broadcast %cst_15 : f32 to vector<1x128xf32>
      %c0_16 = arith.constant 0 : index
      %c0_17 = arith.constant 0 : index
      %21 = vector.load %arg7[%c0_16, %c0_17] : memref<1x128xf32, #tpu.memory_space<vmem>>, vector<1x128xf32>
      tpu.vector_store %arg7[%c0_16, %c0_17], %20 {strides = array<i32>} : memref<1x128xf32, #tpu.memory_space<vmem>>, vector<1x128xf32>,
      %cst_18 = arith.constant 0.000000e+00 : f32
      %22 = vector.broadcast %cst_18 : f32 to vector<128x128xf32>
      %c0_19 = arith.constant 0 : index
      %c0_20 = arith.constant 0 : index
      %23 = vector.load %arg8[%c0_19, %c0_20] : memref<128x128xf32, #tpu.memory_space<vmem>>, vector<128x128xf32>
      tpu.vector_store %arg8[%c0_19, %c0_20], %22 {strides = array<i32>} : memref<128x128xf32, #tpu.memory_space<vmem>>, vector<128x128xf32>,
    } else {
    }
    %c0 = arith.constant 0 : index
    %c0_1 = arith.constant 0 : index
    %3 = vector.load %arg3[%c0, %c0_1] : memref<1x128xf32, #tpu.memory_space<vmem>>, vector<1x128xf32>
    %c0_2 = arith.constant 0 : index
    %c0_3 = arith.constant 0 : index
    %c0_4 = arith.constant 0 : index
    %4 = vector.load %arg2[%c0_2, %c0_3, %c0_4] : memref<1x16x128xf32, #tpu.memory_space<vmem>>, vector<1x16x128xf32>
    %5 = vector.shape_cast %4 : vector<1x16x128xf32> to vector<16x128xf32>
    %6 = vector.broadcast %3 : vector<1x128xf32> to vector<16x128xf32>
    %7 = arith.subf %5, %6 : vector<16x128xf32>
    %c0_5 = arith.constant 0 : index
    %c0_6 = arith.constant 0 : index
    %8 = vector.load %arg7[%c0_5, %c0_6] : memref<1x128xf32, #tpu.memory_space<vmem>>, vector<1x128xf32>
    %cst = arith.constant dense<0.000000e+00> : vector<128xf32>
    %9 = vector.multi_reduction <add>, %7, %cst [0] : vector<16x128xf32> to vector<128xf32>
    %10 = vector.shape_cast %9 : vector<128xf32> to vector<1x128xf32>
    %11 = arith.addf %8, %10 : vector<1x128xf32>
    %c0_7 = arith.constant 0 : index
    %c0_8 = arith.constant 0 : index
    %12 = vector.load %arg7[%c0_7, %c0_8] : memref<1x128xf32, #tpu.memory_space<vmem>>, vector<1x128xf32>
    tpu.vector_store %arg7[%c0_7, %c0_8], %11 {strides = array<i32>} : memref<1x128xf32, #tpu.memory_space<vmem>>, vector<1x128xf32>,
    %c0_9 = arith.constant 0 : index
    %c0_10 = arith.constant 0 : index
    %13 = vector.load %arg8[%c0_9, %c0_10] : memref<128x128xf32, #tpu.memory_space<vmem>>, vector<128x128xf32>
    %cst_11 = arith.constant dense<0.000000e+00> : vector<128x128xf32>
    %14 = tpu.matmul %7, %7, %cst_11 {dimension_numbers = #tpu.dot_dimension_numbers<[0], [0], [1], [1], [0, 1, 1, 1], [], []>} : vector<16x128xf32>, vector<16x128xf32>, vector<128x128xf32> -> vector<128x128xf32>
    %15 = arith.addf %13, %14 : vector<128x128xf32>
    %c0_12 = arith.constant 0 : index
    %c0_13 = arith.constant 0 : index
    %16 = vector.load %arg8[%c0_12, %c0_13] : memref<128x128xf32, #tpu.memory_space<vmem>>, vector<128x128xf32>
    tpu.vector_store %arg8[%c0_12, %c0_13], %15 {strides = array<i32>} : memref<128x128xf32, #tpu.memory_space<vmem>>, vector<128x128xf32>,
    %c3_i32 = arith.constant 3 : i32
    %17 = arith.cmpi eq, %arg1, %c3_i32 : i32
    %18 = arith.extui %17 : i1 to i32
    %c0_i32_14 = arith.constant 0 : i32
    %19 = arith.cmpi ne, %18, %c0_i32_14 : i32
    scf.if %19 {
      %c0_15 = arith.constant 0 : index
      %c0_16 = arith.constant 0 : index
      %20 = vector.load %arg7[%c0_15, %c0_16] : memref<1x128xf32, #tpu.memory_space<vmem>>, vector<1x128xf32>
      %cst_17 = arith.constant 6.400000e+01 : f32
      %21 = vector.broadcast %cst_17 : f32 to vector<1x128xf32>
      %22 = arith.divf %20, %21 : vector<1x128xf32>
      %cst_18 = arith.constant 1.000000e-01 : f32
      %23 = vector.broadcast %cst_18 : f32 to vector<1x128xf32>
      %24 = arith.mulf %23, %22 : vector<1x128xf32>
      %25 = arith.addf %3, %24 : vector<1x128xf32>
      %c0_19 = arith.constant 0 : index
      %c0_20 = arith.constant 0 : index
      %26 = vector.load %arg8[%c0_19, %c0_20] : memref<128x128xf32, #tpu.memory_space<vmem>>, vector<128x128xf32>
      %cst_21 = arith.constant dense<0.000000e+00> : vector<128x128xf32>
      %27 = tpu.matmul %24, %20, %cst_21 {dimension_numbers = #tpu.dot_dimension_numbers<[0], [0], [1], [1], [0, 1, 1, 1], [], []>} : vector<1x128xf32>, vector<1x128xf32>, vector<128x128xf32> -> vector<128x128xf32>
      %28 = arith.subf %26, %27 : vector<128x128xf32>
      %cst_22 = arith.constant dense<0.000000e+00> : vector<128x128xf32>
      %29 = tpu.matmul %20, %24, %cst_22 {dimension_numbers = #tpu.dot_dimension_numbers<[0], [0], [1], [1], [0, 1, 1, 1], [], []>} : vector<1x128xf32>, vector<1x128xf32>, vector<128x128xf32> -> vector<128x128xf32>
      %30 = arith.subf %28, %29 : vector<128x128xf32>
      %cst_23 = arith.constant dense<0.000000e+00> : vector<128x128xf32>
      %31 = tpu.matmul %24, %24, %cst_23 {dimension_numbers = #tpu.dot_dimension_numbers<[0], [0], [1], [1], [0, 1, 1, 1], [], []>} : vector<1x128xf32>, vector<1x128xf32>, vector<128x128xf32> -> vector<128x128xf32>
      %cst_24 = arith.constant 6.400000e+01 : f32
      %32 = vector.broadcast %cst_24 : f32 to vector<128x128xf32>
      %33 = arith.mulf %32, %31 : vector<128x128xf32>
      %34 = arith.addf %30, %33 : vector<128x128xf32>
      %cst_25 = arith.constant 6.300000e+01 : f32
      %35 = vector.broadcast %cst_25 : f32 to vector<128x128xf32>
      %36 = arith.divf %34, %35 : vector<128x128xf32>
      %37 = tpu.iota {dimensions = array<i32: 0>} : vector<128x128xi32>
      %38 = tpu.iota {dimensions = array<i32: 1>} : vector<128x128xi32>
      %39 = arith.cmpi eq, %37, %38 : vector<128x128xi32>
      %c32_i32 = arith.constant 32 : i32
      %40 = vector.broadcast %c32_i32 : i32 to vector<128x128xi32>
      %41 = arith.cmpi slt, %37, %40 : vector<128x128xi32>
      %42 = arith.andi %39, %41 : vector<128x128xi1>
      %cst_26 = arith.constant 1.000000e+00 : f32
      %cst_27 = arith.constant 0.000000e+00 : f32
      %43 = vector.broadcast %cst_26 : f32 to vector<128x128xf32>
      %44 = vector.broadcast %cst_27 : f32 to vector<128x128xf32>
      %45 = arith.select %42, %43, %44 : vector<128x128xi1>, vector<128x128xf32>
      %cst_28 = arith.constant 9.99999974E-6 : f32
      %46 = vector.broadcast %cst_28 : f32 to vector<128x128xf32>
      %47 = arith.mulf %45, %46 : vector<128x128xf32>
      %48 = arith.addf %36, %47 : vector<128x128xf32>
      %c0_29 = arith.constant 0 : index
      %c0_30 = arith.constant 0 : index
      %49 = vector.load %arg4[%c0_29, %c0_30] : memref<128x128xf32, #tpu.memory_space<vmem>>, vector<128x128xf32>
      %cst_31 = arith.constant 0.899999976 : f32
      %50 = vector.broadcast %cst_31 : f32 to vector<128x128xf32>
      %51 = arith.mulf %50, %49 : vector<128x128xf32>
      %cst_32 = arith.constant 1.000000e-01 : f32
      %52 = vector.broadcast %cst_32 : f32 to vector<128x128xf32>
      %53 = arith.mulf %52, %48 : vector<128x128xf32>
      %54 = arith.addf %51, %53 : vector<128x128xf32>
      %55 = arith.mulf %54, %45 : vector<128x128xf32>
      %56 = vector.shape_cast %55 : vector<128x128xf32> to vector<1x128x128xf32>
      %cst_33 = arith.constant dense<0.000000e+00> : vector<1xf32>
      %57 = vector.multi_reduction <add>, %56, %cst_33 [1, 2] : vector<1x128x128xf32> to vector<1xf32>
      %58 = vector.shape_cast %57 : vector<1xf32> to vector<1x1x1xf32>
      %59 = vector.extract %58[0, 0, 0] : f32 from vector<1x1x1xf32>
      %60 = vector.broadcast %59 : f32 to vector<128x128xf32>
      %61 = arith.divf %54, %60 : vector<128x128xf32>
      %cst_34 = arith.constant 3.000000e+00 : f32
      %62 = vector.broadcast %cst_34 : f32 to vector<128x128xf32>
      %63 = arith.mulf %62, %45 : vector<128x128xf32>
      %64 = arith.subf %63, %61 : vector<128x128xf32>
      %cst_35 = arith.constant 5.000000e-01 : f32
      %65 = vector.broadcast %cst_35 : f32 to vector<128x128xf32>
      %66 = arith.mulf %65, %64 : vector<128x128xf32>
      %cst_36 = arith.constant dense<0.000000e+00> : vector<128x128xf32>
      %67 = tpu.matmul %66, %66, %cst_36 {dimension_numbers = #tpu.dot_dimension_numbers<[1], [0], [0], [1], [0, 0, 1, 1], [], []>} : vector<128x128xf32>, vector<128x128xf32>, vector<128x128xf32> -> vector<128x128xf32>
      %cst_37 = arith.constant dense<0.000000e+00> : vector<128x128xf32>
      %68 = tpu.matmul %67, %66, %cst_37 {dimension_numbers = #tpu.dot_dimension_numbers<[1], [0], [0], [1], [0, 0, 1, 1], [], []>} : vector<128x128xf32>, vector<128x128xf32>, vector<128x128xf32> -> vector<128x128xf32>
      %cst_38 = arith.constant 3.000000e+00 : f32
      %69 = vector.broadcast %cst_38 : f32 to vector<128x128xf32>
      %70 = arith.mulf %69, %66 : vector<128x128xf32>
      %cst_39 = arith.constant dense<0.000000e+00> : vector<128x128xf32>
      %71 = tpu.matmul %68, %61, %cst_39 {dimension_numbers = #tpu.dot_dimension_numbers<[1], [0], [0], [1], [0, 0, 1, 1], [], []>} : vector<128x128xf32>, vector<128x128xf32>, vector<128x128xf32> -> vector<128x128xf32>
      %72 = arith.subf %70, %71 : vector<128x128xf32>
      %cst_40 = arith.constant 5.000000e-01 : f32
      %73 = vector.broadcast %cst_40 : f32 to vector<128x128xf32>
      %74 = arith.mulf %73, %72 : vector<128x128xf32>
      %cst_41 = arith.constant dense<0.000000e+00> : vector<128x128xf32>
      %75 = tpu.matmul %74, %74, %cst_41 {dimension_numbers = #tpu.dot_dimension_numbers<[1], [0], [0], [1], [0, 0, 1, 1], [], []>} : vector<128x128xf32>, vector<128x128xf32>, vector<128x128xf32> -> vector<128x128xf32>
      %cst_42 = arith.constant dense<0.000000e+00> : vector<128x128xf32>
      %76 = tpu.matmul %75, %74, %cst_42 {dimension_numbers = #tpu.dot_dimension_numbers<[1], [0], [0], [1], [0, 0, 1, 1], [], []>} : vector<128x128xf32>, vector<128x128xf32>, vector<128x128xf32> -> vector<128x128xf32>
      %cst_43 = arith.constant 3.000000e+00 : f32
      %77 = vector.broadcast %cst_43 : f32 to vector<128x128xf32>
      %78 = arith.mulf %77, %74 : vector<128x128xf32>
      %cst_44 = arith.constant dense<0.000000e+00> : vector<128x128xf32>
      %79 = tpu.matmul %76, %61, %cst_44 {dimension_numbers = #tpu.dot_dimension_numbers<[1], [0], [0], [1], [0, 0, 1, 1], [], []>} : vector<128x128xf32>, vector<128x128xf32>, vector<128x128xf32> -> vector<128x128xf32>
      %80 = arith.subf %78, %79 : vector<128x128xf32>
      %cst_45 = arith.constant 5.000000e-01 : f32
      %81 = vector.broadcast %cst_45 : f32 to vector<128x128xf32>
      %82 = arith.mulf %81, %80 : vector<128x128xf32>
      %cst_46 = arith.constant dense<0.000000e+00> : vector<128x128xf32>
      %83 = tpu.matmul %82, %82, %cst_46 {dimension_numbers = #tpu.dot_dimension_numbers<[1], [0], [0], [1], [0, 0, 1, 1], [], []>} : vector<128x128xf32>, vector<128x128xf32>, vector<128x128xf32> -> vector<128x128xf32>
      %cst_47 = arith.constant dense<0.000000e+00> : vector<128x128xf32>
      %84 = tpu.matmul %83, %82, %cst_47 {dimension_numbers = #tpu.dot_dimension_numbers<[1], [0], [0], [1], [0, 0, 1, 1], [], []>} : vector<128x128xf32>, vector<128x128xf32>, vector<128x128xf32> -> vector<128x128xf32>
      %cst_48 = arith.constant 3.000000e+00 : f32
      %85 = vector.broadcast %cst_48 : f32 to vector<128x128xf32>
      %86 = arith.mulf %85, %82 : vector<128x128xf32>
      %cst_49 = arith.constant dense<0.000000e+00> : vector<128x128xf32>
      %87 = tpu.matmul %84, %61, %cst_49 {dimension_numbers = #tpu.dot_dimension_numbers<[1], [0], [0], [1], [0, 0, 1, 1], [], []>} : vector<128x128xf32>, vector<128x128xf32>, vector<128x128xf32> -> vector<128x128xf32>
      %88 = arith.subf %86, %87 : vector<128x128xf32>
      %cst_50 = arith.constant 5.000000e-01 : f32
      %89 = vector.broadcast %cst_50 : f32 to vector<128x128xf32>
      %90 = arith.mulf %89, %88 : vector<128x128xf32>
      %91 = math.rsqrt %59 : f32
      %92 = vector.broadcast %91 : f32 to vector<128x128xf32>
      %93 = arith.mulf %90, %92 : vector<128x128xf32>
      %c0_51 = arith.constant 0 : index
      %c0_52 = arith.constant 0 : index
      %c0_53 = arith.constant 0 : index
      %94 = vector.load %arg5[%c0_51, %c0_52, %c0_53] : memref<1x128x128xf32, #tpu.memory_space<vmem>>, vector<1x128x128xf32>
      %95 = vector.shape_cast %94 : vector<1x128x128xf32> to vector<128x128xf32>
      %96 = vector.shape_cast %93 : vector<128x128xf32> to vector<1x128x128xf32>
      tpu.vector_store %arg5[%c0_51, %c0_52, %c0_53], %96 {strides = array<i32>} : memref<1x128x128xf32, #tpu.memory_space<vmem>>, vector<1x128x128xf32>,
      %c0_54 = arith.constant 0 : index
      %c0_55 = arith.constant 0 : index
      %c0_56 = arith.constant 0 : index
      %97 = vector.load %arg6[%c0_54, %c0_55, %c0_56] : memref<1x1x128xf32, #tpu.memory_space<vmem>>, vector<1x1x128xf32>
      %98 = vector.shape_cast %97 : vector<1x1x128xf32> to vector<1x128xf32>
      %99 = vector.shape_cast %25 : vector<1x128xf32> to vector<1x1x128xf32>
      tpu.vector_store %arg6[%c0_54, %c0_55, %c0_56], %99 {strides = array<i32>} : memref<1x1x128xf32, #tpu.memory_space<vmem>>, vector<1x1x128xf32>,
    } else {
    }
    return
  }
  func.func @transform_0(%arg0: i32, %arg1: i32) -> (i32, i32, i32) {
    %c0_i32 = arith.constant 0 : i32
    %c0_i32_0 = arith.constant 0 : i32
    return %arg0, %arg1, %c0_i32 : i32, i32, i32
  }
  func.func @transform_1(%arg0: i32, %arg1: i32) -> (i32, i32) {
    %c0_i32 = arith.constant 0 : i32
    %c0_i32_0 = arith.constant 0 : i32
    %c0_i32_1 = arith.constant 0 : i32
    return %c0_i32, %c0_i32_0 : i32, i32
  }
  func.func @transform_2(%arg0: i32, %arg1: i32) -> (i32, i32) {
    %c0_i32 = arith.constant 0 : i32
    %c0_i32_0 = arith.constant 0 : i32
    %c0_i32_1 = arith.constant 0 : i32
    return %c0_i32, %c0_i32_0 : i32, i32
  }
  func.func @transform_3(%arg0: i32, %arg1: i32) -> (i32, i32, i32) {
    %c0_i32 = arith.constant 0 : i32
    %c0_i32_0 = arith.constant 0 : i32
    %c0_i32_1 = arith.constant 0 : i32
    return %arg0, %c0_i32, %c0_i32_0 : i32, i32, i32
  }
  func.func @transform_4(%arg0: i32, %arg1: i32) -> (i32, i32, i32) {
    %c0_i32 = arith.constant 0 : i32
    %c0_i32_0 = arith.constant 0 : i32
    %c0_i32_1 = arith.constant 0 : i32
    return %arg0, %c0_i32, %c0_i32_0 : i32, i32, i32
  }
}

</mosaic_0001>

<bundles_post_ra>
// kernel: tpu_custom_call.1
= control target key start
LH: loop header
LB: loop body
LE: loop exit
PB: predicated region body
PF: predicated region fallthrough
CT: control target
= control target key end

     0   :  { %s5717_s0 = inlined_call_operand.hbm [shape: f32[2,64,128], index: 0, kind: input, shape index: {}]   ;;  %s5718_s1 = inlined_call_operand.vmem [shape: f32[1,128], index: 1, kind: input, shape index: {}]   ;;  %s5719_s2 = inlined_call_operand.hbm [shape: f32[128,128], index: 2, kind: input, shape index: {}]   ;;  %s5720_s3 = inlined_call_operand.hbm [shape: f32[2,128,128], index: 3, kind: output, shape index: {0}]   ;;  %s5721_s4 = inlined_call_operand.hbm [shape: f32[2,1,128], index: 4, kind: output, shape index: {1}]  }
   0x1   :  { %5733 = sst [smem:[#allocation21_spill]] %s5717_s0 }
   0x2   :  { %5734 = sst [smem:[#allocation22_spill]] %s5718_s1 }
   0x3   :  { %5735 = sst [smem:[#allocation23_spill]] %s5719_s2 }
   0x4   :  { %5736 = sst [smem:[#allocation24_spill]] %s5720_s3 }
   0x5   :  { %5737 = sst [smem:[#allocation25_spill]] %s5721_s4 }
   0x6   :  { %10 = vsyncpa [#allocation5], 0 }
   0x7   :  { %12 = vsyncpa [#allocation5 + $0x1], 0 }
   0x8   :  { %13 = vsyncpa [#allocation8], 0 }
   0x9   :  { %14 = vsyncpa [#allocation6], 0 }
   0xa   :  { %16 = vsyncpa [#allocation6 + $0x1], 0 }
   0xb   :  { %17 = vsyncpa [#allocation11], 0 }
   0xc   :  { %19 = vsyncpa [#allocation11 + $0x1], 0  ;;  %s4648_s15 = smov 0   ;;  %s4650_s16 = smov 0  }
   0xd   :  { %s4652_s17 = smov 0   ;;  %s4654_s18 = smov 0  }
   0xe   :  { %s4656_s19 = smov 0   ;;  %s4658_s20 = smov 0  }
   0xf   :  { %s4660_s21 = smov 0   ;;  %s4662_s22 = smov 0  }
  0x10   :  { %s4664_s23 = smov 0   ;;  %s4666_s24 = smov 0  }
  0x11   :  { %s4668_s25 = smov 0  }
  0x12 LB: > { %5738 = sst [smem:[#allocation16_spill]] %s4571_s15  ;;  %s3210_s26 = sadd.s32 4294967295, %s4611_s25   ;;  %s4611_s25 = sphi %s4668_s25, %s25_s25   ;;  %s4607_s24 = sphi %s4666_s24, %s5774_s24   ;;  %s4603_s23 = sphi %s4664_s23, %s5773_s23   ;;  %s4599_s22 = sphi %s4662_s22, %s5772_s22   ;;  %s4595_s21 = sphi %s4660_s21, %s5771_s21   ;;  %s4591_s20 = sphi %s4658_s20, %s5770_s20   ;;  %s4587_s19 = sphi %s4656_s19, %s5769_s19   ;;  %s4583_s18 = sphi %s4654_s18, %s5768_s18   ;;  %s4579_s17 = sphi %s4652_s17, %s5767_s17   ;;  %s4575_s16 = sphi %s4650_s16, %s5766_s16   ;;  %s4571_s15 = sphi %s4648_s15, %s5765_s15  }
  0x13   : > { %5739 = sst [smem:[#allocation17_spill]] %s4599_s22  ;;  %s3211_s27 = sadd.s32 4294967294, %s4611_s25  }
  0x14   : > { %p59_p0 = scmp.ne.s32.totalorder %s4587_s19, %s4583_s18  ;;  %p4704_p1 = scmp.eq.s32.totalorder %s3210_s26, 0 }
  0x15   : > { %s114_s29 = sadd.s32 1, %s4579_s17  ;;  %p124_p2 = scmp.ne.s32.totalorder %s4579_s17, %s4575_s16 }
  0x16   : > { %p4713_p3 = por %p4704_p1, %p59_p0  ;;  %p125_p4 = scmp.eq.s32.totalorder %s3210_s26, 7 }
  0x17   : > { %p130_p5 = scmp.ne.s32.totalorder %s4575_s16, %s4571_s15  ;;  %p131_p6 = scmp.eq.s32.totalorder %s3211_s27, 7 }
  0x18   : > { %p4719_p7 = por %p125_p4, %p124_p2  ;;  %p3212_p8 = scmp.ge.s32.totalorder %s4611_s25, 1 }
  0x19   : > { %p4724_p9 = por %p131_p6, %p130_p5  ;;  %p164_p10 = scmp.lt.s32.totalorder %s4611_s25, 9 }
  0x1a   : > { %s5742_s5 = scalar_select %p4719_p7, 1, 0 }
  0x1b   : > { %s5744_s6 = scalar_select %p4724_p9, 1, 0 }
  0x1c   : > { %5743 = sst [smem:[#allocation18_spill]] %s5742_s5  ;;  %p4729_p11 = pnand %p3212_p8, %p164_p10 }
  0x1d   : > { %5745 = sst [smem:[#allocation19_spill]] %s5744_s6  ;;  %s4613_s8 = smov [#allocation7]  }
  0x1e   : > { %s179_s9 = sshll.u32 %s4613_s8, 4  ;;  %p4284_p12 = pneg %p4729_p11  ;;  %s180_s9 = int_to_ptr.vmem [resolvable:$true] %s179_s9 }
  0x1f   : > { %s4414_s10 = scalar_lea.vmem %s180_s9, 2048  ;;  %p4422_p6 = scmp.lt.s32.totalorder %s180_s9, %s180_s9 }
  0x20   : > { %p4285_p13 = pnand %p4284_p12, %p4704_p1  ;;  %p4415_p2 = scmp.ne.s32.totalorder %s180_s9, %s4414_s10 }
  0x21   : > { %p4423_p9 = scmp.lt.s32.totalorder %s4414_s10, %s4414_s10 }
  0x22   : > { %p4405_p0 = pneg %p4285_p13 }
  0x23   : > { %p4424_p7 = por %p4423_p9, %p4422_p6 }
  0x24   : > { %p4417_p4 = pnand %p4415_p2, %p4405_p0 }
  0x26   : > { %p4418_p5 = pneg %p4417_p4 }
  0x28   : > { %p4425_p8 = pnand %p4424_p7, %p4418_p5 }
  0x2a   : > { %4428 = shalt.err (!%p4425_p8)
}
  0x2b   : > { %s5723_s11 = smov 128   ;;  %s5724_s12 = smov 8  }
  0x2c   : > { %s5747_s2 = sld [smem:[#allocation23_spill]]  ;;  %s34_s18 = sadd.s32 1, %s4603_s23 }
  0x2d   : > { %p35_p7 = scmp.ge.s32.totalorder %s34_s18, 4  ;;  %s37_s26 = sadd.s32 1, %s4607_s24 }
  0x2e   : > { %s46_s27 = sadd.s32 1, %s4591_s20  ;;  %p53_p9 = scmp.ne.s32.totalorder %s4591_s20, %s4587_s19 }
  0x2f   : > { %s5776_s18 = smov (%p35_p7, %s34_s18), 0  ;;  %s5778_s26 = smov (!%p35_p7, %s37_s26), %s4607_s24 }
  0x30   : > { %5748 = sst [smem:[#allocation20_spill]] %s5776_s18  ;;  %s42_s8 = ssub.s32 %s4603_s23, %s5776_s18 }
  0x31   : > { %p54_p10 = scmp.eq.s32.totalorder %s4611_s25, 0  ;;  %p39_p12 = scmp.ge.s32.totalorder %s5778_s26, 2 }
  0x32   : > { %4287 = dma.hbm_to_vmem [thread:$0]  (!%p4285_p13), %s5747_s2, 2048, %s180_s9, [#allocation8], %s5723_s11, %s5723_s11, %s5724_s12  }
  0x33   : > { %p4300_p0 = scmp.lt.s32.totalorder %s4611_s25, 8  ;;  %p4755_p13 = por %p54_p10, %p53_p9 }
  0x34   : > { %s193_s10 = sand.u32 1, %s4591_s20   ;;  %s5780_s26 = smov (%p39_p12, %s5778_s26), 0 }
  0x35   : > { %s3215_s13 = sshll.u32 %s193_s10, 4  ;;  %s41_s14 = ssub.s32 %s4607_s24, %s5780_s26 }
  0x36   : > { %s43_s11 = sor.u32 %s42_s8, %s41_s14  ;;  %p112_p2 = scmp.eq.s32.totalorder %s41_s14, 0 }
  0x37   : > { %p44_p4 = scmp.eq.s32.totalorder %s43_s11, 0  ;;  %s3216_s12 = sshll.u32 %s4603_s23, 1 }
  0x38   : > { %s4768_s2 = scalar_select %p112_p2, %s4579_s17, %s114_s29  }
  0x39   : > { %s4771_s18 = scalar_select %p44_p4, %s4591_s20, %s46_s27  }
  0x3a   : > { %s3217_s6 = sshll.u32 %s4607_s24, 3  ;;  %s197_s15 = scalar_lea.vmem [#allocation4], %s3215_s13 }
  0x3b   : > { %s206_s4 = sshll.u32 %s197_s15, 4  ;;  %s203_s3 = sadd.s32 %s3217_s6, %s3216_s12  ;;  %s207_s4 = int_to_ptr.vmem [resolvable:$true] %s206_s4 }
  0x3c   : > { %s3218_s5 = sshll.u32 %s203_s3, 7  ;;  %p4778_p5 = pnand %p4300_p0, %p4755_p13 }
  0x3d   : > { %s5751_s0 = sld [smem:[#allocation21_spill]]  ;;  %s194_s14 = scalar_lea.sflag [#allocation5], %s193_s10 }
  0x3e   : > { %p4431_p6 = pneg %p4778_p5  ;;  %s4442_s27 = scalar_lea.vmem %s207_s4, 256 }
  0x3f   : > { %p4443_p8 = scmp.ne.s32.totalorder %s207_s4, %s4442_s27  ;;  %s4616_s15 = smov [#allocation4]  }
  0x40   : > { %s4447_s3 = sshll.u32 %s4616_s15, 4  ;;  %s4448_s3 = int_to_ptr.vmem [resolvable:$false] %s4447_s3 }
  0x41   : > { %p4445_p7 = pnand %p4443_p8, %p4431_p6  ;;  %s4449_s6 = scalar_lea.vmem %s4448_s3, 512 }
  0x42   : > { %p4450_p10 = scmp.lt.s32.totalorder %s207_s4, %s4448_s3  ;;  %p4451_p12 = scmp.lt.s32.totalorder %s4449_s6, %s4442_s27 }
  0x43   : > { %s205_s29 = scalar_lea.hbm %s5751_s0, %s3218_s5  ;;  %p4446_p9 = pneg %p4445_p7 }
  0x44   : > { %p4452_p0 = por %p4451_p12, %p4450_p10 }
  0x46   : > { %p4453_p13 = pnand %p4452_p0, %p4446_p9 }
  0x48   : > { %4456 = shalt.err (!%p4453_p13)
}
  0x49   : > { %s5752_s12 = smov 8   ;;  %s5753_s5 = smov 128  }
  0x4a   : > { %4291 = dma.hbm_to_vmem [thread:$0]  (!%p4778_p5), %s205_s29, 256, %s207_s4, %s194_s14, %s5753_s5, %s5753_s5, %s5752_s12  }
  0x4b   : > { %218 = sbr.rel (%p4729_p11) target bundleno = 3185 (0xc71), region = 32  ;;  %s220_s9 = sand.u32 (!%p4729_p11), 1, %s4587_s19  }
  0x4c   : > { %s4795_s10 = sshll.u32 (!%p4729_p11), %s220_s9, 4  ;;  %s221_s13 = scalar_lea.sflag (!%p4729_p11), [#allocation5], %s220_s9 }
  0x4d   : > { %s224_s8 = scalar_lea.vmem (!%p4729_p11), [#allocation4], %s4795_s10 }
  0x50   : > { %4554 = dma.done.wait (%p4713_p3), %s221_s13, 256  }
  0x51   : > { %4556 = vsyncadd (%p4713_p3), %s221_s13, 4294967040 }
  0x52   : > { %4558 = dma.done.wait (%p4704_p1), [#allocation8], 2048  }
  0x53   : > { %4560 = vsyncadd (%p4704_p1), [#allocation8], 4294965248  ;;  %s4807_s4 = sand.u32 1, %s4575_s16   ;;  %p3223_p11 = scmp.ne.s32.totalorder %s4595_s21, 0 }
  0x54   : > { %s3222_s22 = sshll.u32 %s4807_s4, 7  ;;  %s256_s11 = scalar_lea.vmem [#allocation10], %s4807_s4 }
  0x55   : > { %s4810_s7 = scalar_lea.vmem [#allocation9], %s3222_s22  ;;  %261 = sbr.rel (%p3223_p11) target bundleno = 100 (0x64), region = 44 }
  0x5a   : > { %v4617_v0 = vmov 0.0  }
  0x5b   : > { %262 = vst [vmem:[#allocation2] sm:$0x1] %v4617_v0  ;;  %263 = vst [vmem:[#allocation3 + $0x30] sm:$0xff] %v4617_v0 }
  0x5c   : > { %264 = vst [vmem:[#allocation3] sm:$0xff] %v4617_v0  ;;  %265 = vst [vmem:[#allocation3 + $0x58] sm:$0xff] %v4617_v0 }
  0x5d   : > { %266 = vst [vmem:[#allocation3 + $0x18] sm:$0xff] %v4617_v0  ;;  %267 = vst [vmem:[#allocation3 + $0x50] sm:$0xff] %v4617_v0 }
  0x5e   : > { %268 = vst [vmem:[#allocation3 + $0x68] sm:$0xff] %v4617_v0  ;;  %269 = vst [vmem:[#allocation3 + $0x8] sm:$0xff] %v4617_v0 }
  0x5f   : > { %270 = vst [vmem:[#allocation3 + $0x48] sm:$0xff] %v4617_v0  ;;  %271 = vst [vmem:[#allocation3 + $0x40] sm:$0xff] %v4617_v0 }
  0x60   : > { %272 = vst [vmem:[#allocation3 + $0x20] sm:$0xff] %v4617_v0  ;;  %273 = vst [vmem:[#allocation3 + $0x10] sm:$0xff] %v4617_v0 }
  0x61   : > { %274 = vst [vmem:[#allocation3 + $0x38] sm:$0xff] %v4617_v0  ;;  %275 = vst [vmem:[#allocation3 + $0x60] sm:$0xff] %v4617_v0 }
  0x62   : > { %276 = vst [vmem:[#allocation3 + $0x70] sm:$0xff] %v4617_v0  ;;  %277 = vst [vmem:[#allocation3 + $0x78] sm:$0xff] %v4617_v0 }
  0x63   : > { %278 = vst [vmem:[#allocation3 + $0x28] sm:$0xff] %v4617_v0 }
  0x64 PF: > { %v283_v1 = vlaneseq  ;;  %s5754_s1 = sld [smem:[#allocation22_spill]]  ;;  %v280_v5 = vld [vmem:[%s224_s8] sm:$0xff]  ;;  %v281_v6 = vld [vmem:[%s224_s8 + $0x8] sm:$0xff]  ;;  %vm348_vm0 = vcmask 130048   ;;  %p3240_p1 = scmp.ne.s32.totalorder %s4595_s21, 3 }
  0x65   : > { %v290_v16 = vld [vmem:[#allocation2] sm:$0x1]  ;;  %v301_v35 = vld [vmem:[#allocation3] sm:$0xff]  ;;  %v300_v37 = vld [vmem:[#allocation3 + $0x30] sm:$0xff] }
  0x66   : > { %v4815_v2 = vshrl.u32 %v283_v1, 7  ;;  %v303_v41 = vld [vmem:[#allocation3 + $0x18] sm:$0xff]  ;;  %v305_v47 = vld [vmem:[#allocation3 + $0x68] sm:$0xff]  ;;  %v304_v49 = vld [vmem:[#allocation3 + $0x50] sm:$0xff] }
  0x67   : > { %v302_v43 = vld [vmem:[#allocation3 + $0x58] sm:$0xff]  ;;  %v307_v53 = vld [vmem:[#allocation3 + $0x48] sm:$0xff]  ;;  %v309_v59 = vld [vmem:[#allocation3 + $0x20] sm:$0xff] }
  0x68   : > { %v285_v4 = vsub.s32 0, %v4815_v2  ;;  %v306_v55 = vld [vmem:[#allocation3 + $0x8] sm:$0xff]  ;;  %v308_v61 = vld [vmem:[#allocation3 + $0x40] sm:$0xff] }
  0x6a   : > { %v4820_v3 = vld [vmem:[%s5754_s1] sm:$0x1] }
  0x6b   : > { %v286_v7 = vrot.slane %v4820_v3, %v285_v4  ;;  %v311_v4 = vld [vmem:[#allocation3 + $0x38] sm:$0xff] }
  0x6d   : > { %v288_v8 = vsub.f32 %v280_v5, %v286_v7  ;;  %v289_v9 = vsub.f32 %v281_v6, %v286_v7  ;;  %v310_v6 = vld [vmem:[#allocation3 + $0x10] sm:$0xff] }
  0x6f   : > { %316 = vxpose.xlu0.b32.start [1/2] (short) %v288_v8, 128  ;;  %v291_v10 = vadd.f32 %v289_v9, %v288_v8  ;;  %3656 = vmatprep.subr.mxu0 %v289_v9 }
  0x70   : > { %3657 = vmatpush3.msra.mxu0 %v289_v9  ;;  %4266 = vmatprep.subr.mxu1 %v289_v9 }
  0x71   : > { %v292_v11 = vrot.slane %v291_v10, 4  ;;  %3658 = vmatprep.subr.mxu0 %v288_v8  ;;  %4268 = vmatpush3.msra.mxu1 %v289_v9 }
  0x72   : > { %3659 = vmatpush3.msra.mxu0 %v288_v8  ;;  %4267 = vmatprep.subr.mxu1 %v288_v8 }
  0x73   : > { %317 = vxpose.xlu0.b32.end [2/2] (short) %v289_v9, 128  ;;  %v293_v12 = vadd.f32 %v292_v11, %v291_v10  ;;  %4269 = vmatpush3.msra.mxu1 %v288_v8  ;;  %v313_v10 = vld [vmem:[#allocation3 + $0x70] sm:$0xff] }
  0x75   : > { %v294_v13 = vrot.slane %v293_v12, 2 }
  0x77   : > { %v295_v14 = vadd.f32 %v294_v13, %v293_v12  ;;  %v312_v12 = vld [vmem:[#allocation3 + $0x60] sm:$0xff] }
  0x79   : > { %v296_v15 = vrot.slane %v295_v14, 1 }
  0x7b   : > { %v297_v17 = vadd.f32 %v296_v15, %v295_v14 }
  0x7d   : > { %v298_v18 = vadd.f32 %v297_v17, %v290_v16  ;;  %v315_v16 = vld [vmem:[#allocation3 + $0x28] sm:$0xff] }
  0x7f   : > { %299 = vst [vmem:[#allocation2] sm:$0x1] %v298_v18  ;;  %v314_v18 = vld [vmem:[#allocation3 + $0x78] sm:$0xff] }
  0xeb   : > { %v332_v19 = vpop.trf.xlu0 }
  0xec   : > { %3660 = vmatprep.mubr.msk.f32.mxu0 %vm348_vm0, %v332_v19 }
  0xef   : > { %v333_v20 = vpop.trf.xlu0 }
  0xf0   : > { %3661 = vmatmul.mubr.msk.f32.vlgmr.msra.gmra.mxu0 %vm348_vm0, %v333_v20 }
  0xf3   : > { %v334_v21 = vpop.trf.xlu0 }
  0xf4   : > { %3663 = vmatprep.mubr.msk.f32.mxu0 %vm348_vm0, %v334_v21 }
  0xf7   : > { %v335_v22 = vpop.trf.xlu0 }
  0xf8   : > { %3664 = vmatmul.mubr.msk.f32.gmra.mxu0 %vm348_vm0, %v335_v22 }
  0xfb   : > { %v336_v23 = vpop.trf.xlu0 }
  0xfc   : > { %3666 = vmatprep.mubr.msk.f32.mxu0 %vm348_vm0, %v336_v23 }
  0xff   : > { %v337_v24 = vpop.trf.xlu0 }
 0x100   : > { %3667 = vmatmul.mubr.msk.f32.gmra.mxu0 %vm348_vm0, %v337_v24 }
 0x103   : > { %v338_v25 = vpop.trf.xlu0 }
 0x104   : > { %3669 = vmatprep.mubr.msk.f32.mxu0 %vm348_vm0, %v338_v25 }
 0x107   : > { %v339_v26 = vpop.trf.xlu0 }
 0x108   : > { %3670 = vmatmul.mubr.msk.f32.gmra.mxu0 %vm348_vm0, %v339_v26 }
 0x10b   : > { %v340_v27 = vpop.trf.xlu0 }
 0x10c   : > { %3672 = vmatprep.mubr.msk.f32.mxu1 %vm348_vm0, %v340_v27 }
 0x10f   : > { %v341_v28 = vpop.trf.xlu0 }
 0x110   : > { %3673 = vmatmul.mubr.msk.f32.vlgmr.msra.gmra.mxu1 %vm348_vm0, %v341_v28 }
 0x113   : > { %v342_v29 = vpop.trf.xlu0 }
 0x114   : > { %3675 = vmatprep.mubr.msk.f32.mxu1 %vm348_vm0, %v342_v29 }
 0x117   : > { %v343_v30 = vpop.trf.xlu0 }
 0x118   : > { %3676 = vmatmul.mubr.msk.f32.gmra.mxu1 %vm348_vm0, %v343_v30 }
 0x11b   : > { %v344_v31 = vpop.trf.xlu0 }
 0x11c   : > { %3678 = vmatprep.mubr.msk.f32.mxu1 %vm348_vm0, %v344_v31 }
 0x11f   : > { %v345_v32 = vpop.trf.xlu0 }
 0x120   : > { %3679 = vmatmul.mubr.msk.f32.gmra.mxu1 %vm348_vm0, %v345_v32 }
 0x123   : > { %v346_v33 = vpop.trf.xlu0 }
 0x124   : > { %3681 = vmatprep.mubr.msk.f32.mxu1 %vm348_vm0, %v346_v33 }
 0x127   : > { %v347_v34 = vpop.trf.xlu0 }
 0x128   : > { %3682 = vmatmul.mubr.msk.f32.gmra.mxu1 %vm348_vm0, %v347_v34 }
 0x1b0   : > { %v3662_v36 = vpop.f32.mrf.mxu0 }
 0x1b1   : > { %v543_v38 = vadd.f32 %v3662_v36, %v301_v35 }
 0x1b2   : > { %v463_v39 = vpop.f32.mrf.mxu0 }
 0x1b3   : > { %559 = vst [vmem:[#allocation3] sm:$0xff] %v543_v38  ;;  %v542_v40 = vadd.f32 %v463_v39, %v300_v37 }
 0x1b5   : > { %558 = vst [vmem:[#allocation3 + $0x30] sm:$0xff] %v542_v40 }
 0x1b8   : > { %v3665_v42 = vpop.f32.mrf.mxu0 }
 0x1b9   : > { %v545_v44 = vadd.f32 %v3665_v42, %v303_v41 }
 0x1ba   : > { %v473_v45 = vpop.f32.mrf.mxu0 }
 0x1bb   : > { %561 = vst [vmem:[#allocation3 + $0x18] sm:$0xff] %v545_v44  ;;  %v544_v46 = vadd.f32 %v473_v45, %v302_v43 }
 0x1bd   : > { %560 = vst [vmem:[#allocation3 + $0x58] sm:$0xff] %v544_v46 }
 0x1c0   : > { %v3668_v48 = vpop.f32.mrf.mxu0 }
 0x1c1   : > { %v547_v50 = vadd.f32 %v3668_v48, %v305_v47 }
 0x1c2   : > { %v483_v51 = vpop.f32.mrf.mxu0 }
 0x1c3   : > { %563 = vst [vmem:[#allocation3 + $0x68] sm:$0xff] %v547_v50  ;;  %v546_v52 = vadd.f32 %v483_v51, %v304_v49 }
 0x1c5   : > { %562 = vst [vmem:[#allocation3 + $0x50] sm:$0xff] %v546_v52 }
 0x1c8   : > { %v3671_v54 = vpop.f32.mrf.mxu0 }
 0x1c9   : > { %v549_v56 = vadd.f32 %v3671_v54, %v307_v53 }
 0x1ca   : > { %v493_v57 = vpop.f32.mrf.mxu0 }
 0x1cb   : > { %565 = vst [vmem:[#allocation3 + $0x48] sm:$0xff] %v549_v56  ;;  %v548_v58 = vadd.f32 %v493_v57, %v306_v55 }
 0x1cd   : > { %564 = vst [vmem:[#allocation3 + $0x8] sm:$0xff] %v548_v58 }
 0x1d0   : > { %v3674_v60 = vpop.f32.mrf.mxu1 }
 0x1d1   : > { %v551_v62 = vadd.f32 %v3674_v60, %v309_v59 }
 0x1d2   : > { %v503_v63 = vpop.f32.mrf.mxu1 }
 0x1d3   : > { %567 = vst [vmem:[#allocation3 + $0x20] sm:$0xff] %v551_v62  ;;  %v550_v0 = vadd.f32 %v503_v63, %v308_v61 }
 0x1d5   : > { %566 = vst [vmem:[#allocation3 + $0x40] sm:$0xff] %v550_v0 }
 0x1d8   : > { %v3677_v5 = vpop.f32.mrf.mxu1 }
 0x1d9   : > { %v553_v7 = vadd.f32 %v3677_v5, %v311_v4 }
 0x1da   : > { %v513_v8 = vpop.f32.mrf.mxu1 }
 0x1db   : > { %569 = vst [vmem:[#allocation3 + $0x38] sm:$0xff] %v553_v7  ;;  %v552_v9 = vadd.f32 %v513_v8, %v310_v6 }
 0x1dd   : > { %568 = vst [vmem:[#allocation3 + $0x10] sm:$0xff] %v552_v9 }
 0x1e0   : > { %v3680_v11 = vpop.f32.mrf.mxu1 }
 0x1e1   : > { %v555_v13 = vadd.f32 %v3680_v11, %v313_v10 }
 0x1e2   : > { %v523_v14 = vpop.f32.mrf.mxu1 }
 0x1e3   : > { %571 = vst [vmem:[#allocation3 + $0x70] sm:$0xff] %v555_v13  ;;  %v554_v15 = vadd.f32 %v523_v14, %v312_v12 }
 0x1e5   : > { %570 = vst [vmem:[#allocation3 + $0x60] sm:$0xff] %v554_v15 }
 0x1e8   : > { %v3683_v17 = vpop.f32.mrf.mxu1 }
 0x1e9   : > { %v557_v19 = vadd.f32 %v3683_v17, %v315_v16  ;;  %577 = sbr.rel (%p3240_p1) target bundleno = 3133 (0xc3d), region = 48 }
 0x1ea   : > { %v533_v20 = vpop.f32.mrf.mxu1 }
 0x1eb   : > { %573 = vst [vmem:[#allocation3 + $0x28] sm:$0xff] %v557_v19  ;;  %v556_v21 = vadd.f32 %v533_v20, %v314_v18 }
 0x1ed   : > { %572 = vst [vmem:[#allocation3 + $0x78] sm:$0xff] %v556_v21 }
 0x1ee   : > { %v578_v22 = vld [vmem:[#allocation2] sm:$0x1]  ;;  %vm680_vm1 = vcmask 1040384   ;;  %vm631_vm2 = vcmask 7168   ;;  %v583_v13 = vld [vmem:[#allocation3 + $0x30] sm:$0xff]  ;;  %v584_v15 = vld [vmem:[#allocation3] sm:$0xff] }
 0x1ef   : > { %v580_v23 = vmul.f32 0.015625, %v578_v22  ;;  %3684 = vmatprep.subr.msk.mxu0 %vm680_vm1, %v578_v22  ;;  %v1301_v18 = vand.u32 127, %v283_v1  ;;  %v1285_v21 = vadd.s32 8, %v4815_v2 }
 0x1f0   : > { %3685 = vmatpush3.msk.msra.mxu0 %vm680_vm1, %v578_v22 }
 0x1f1   : > { %v581_v24 = vmul.f32 0.1, %v580_v23  ;;  %vm1302_vm3 = vcmp.eq.s32.totalorder %v4815_v2, %v1301_v18  ;;  %vm1303_vm4 = vcmp.eq.s32.totalorder %v1285_v21, %v1301_v18 }
 0x1f3   : > { %599 = vxpose.xlu0.b32.start.end [1/1] (short) %v581_v24, 128  ;;  %v582_v25 = vadd.f32 %v581_v24, %v4820_v3  ;;  %3736 = vmatprep.subr.msk.mxu0 %vm680_vm1, %v581_v24 }
 0x1f4   : > { %3710 = vmatprep.subr.msk.mxu1 %vm680_vm1, %v581_v24 }
 0x1f5   : > { %3053 = vst [vmem:[%s256_s11] sm:$0x1] %v582_v25  ;;  %3711 = vmatpush3.msk.msra.mxu1 %vm680_vm1, %v581_v24 }
 0x230   : > { %845 = vxpose.xlu0.b32.start.end [1/1] (short) %v578_v22, 128 }
 0x26f   : > { %v615_v26 = vpop.trf.xlu0 }
 0x270   : > { %3686 = vmatprep.mubr.msk.f32.mxu0 %vm631_vm2, %v615_v26 }
 0x273   : > { %v616_v27 = vpop.trf.xlu0 }
 0x274   : > { %3687 = vmatmul.mubr.msk.f32.vlgmr.msra.gmra.mxu0 %vm631_vm2, %v616_v27 }
 0x275   : > { %3737 = vmatpush3.msk.msra.mxu0 %vm680_vm1, %v581_v24  ;;  %v1286_v24 = vadd.s32 16, %v4815_v2 }
 0x277   : > { %v617_v28 = vpop.trf.xlu0  ;;  %vm1304_vm5 = vcmp.eq.s32.totalorder %v1286_v24, %v1301_v18 }
 0x278   : > { %3689 = vmatprep.mubr.msk.f32.mxu0 %vm631_vm2, %v617_v28 }
 0x27b   : > { %v618_v3 = vpop.trf.xlu0 }
 0x27c   : > { %3690 = vmatmul.mubr.msk.f32.gmra.mxu0 %vm631_vm2, %v618_v3 }
 0x27f   : > { %v619_v29 = vpop.trf.xlu0 }
 0x280   : > { %3692 = vmatprep.mubr.msk.f32.mxu0 %vm631_vm2, %v619_v29 }
 0x283   : > { %v620_v30 = vpop.trf.xlu0 }
 0x284   : > { %3693 = vmatmul.mubr.msk.f32.gmra.mxu0 %vm631_vm2, %v620_v30 }
 0x287   : > { %v621_v31 = vpop.trf.xlu0 }
 0x288   : > { %3695 = vmatprep.mubr.msk.f32.mxu0 %vm631_vm2, %v621_v31 }
 0x28b   : > { %v622_v32 = vpop.trf.xlu0 }
 0x28c   : > { %3696 = vmatmul.mubr.msk.f32.gmra.mxu0 %vm631_vm2, %v622_v32 }
 0x28f   : > { %v623_v33 = vpop.trf.xlu0 }
 0x290   : > { %3698 = vmatprep.mubr.msk.f32.mxu0 %vm631_vm2, %v623_v33 }
 0x293   : > { %v624_v34 = vpop.trf.xlu0 }
 0x294   : > { %3699 = vmatmul.mubr.msk.f32.gmra.mxu0 %vm631_vm2, %v624_v34 }
 0x297   : > { %v625_v35 = vpop.trf.xlu0 }
 0x298   : > { %3701 = vmatprep.mubr.msk.f32.mxu0 %vm631_vm2, %v625_v35 }
 0x29b   : > { %v626_v36 = vpop.trf.xlu0 }
 0x29c   : > { %3702 = vmatmul.mubr.msk.f32.gmra.mxu0 %vm631_vm2, %v626_v36 }
 0x29f   : > { %v627_v37 = vpop.trf.xlu0 }
 0x2a0   : > { %3704 = vmatprep.mubr.msk.f32.mxu0 %vm631_vm2, %v627_v37 }
 0x2a3   : > { %v628_v38 = vpop.trf.xlu0 }
 0x2a4   : > { %3705 = vmatmul.mubr.msk.f32.gmra.mxu0 %vm631_vm2, %v628_v38 }
 0x2a7   : > { %v629_v39 = vpop.trf.xlu0 }
 0x2a8   : > { %3707 = vmatprep.mubr.msk.f32.mxu0 %vm631_vm2, %v629_v39 }
 0x2ab   : > { %v630_v40 = vpop.trf.xlu0 }
 0x2ac   : > { %3708 = vmatmul.mubr.msk.f32.gmra.mxu0 %vm631_vm2, %v630_v40 }
 0x2ad   : > { %3738 = vmatprep.mubr.msk.f32.mxu0 %vm631_vm2, %v615_v26 }
 0x2af   : > { %v861_v41 = vpop.trf.xlu0 }
 0x2b0   : > { %3712 = vmatprep.mubr.msk.f32.mxu1 %vm631_vm2, %v861_v41  ;;  %3739 = vmatmul.mubr.msk.f32.vlgmr.msra.gmra.mxu0 %vm631_vm2, %v616_v27  ;;  %v585_v27 = vld [vmem:[#allocation3 + $0x58] sm:$0xff] }
 0x2b1   : > { %3741 = vmatprep.mubr.msk.f32.mxu0 %vm631_vm2, %v617_v28  ;;  %v586_v28 = vld [vmem:[#allocation3 + $0x18] sm:$0xff] }
 0x2b3   : > { %v862_v42 = vpop.trf.xlu0 }
 0x2b4   : > { %3713 = vmatmul.mubr.msk.f32.vlgmr.msra.gmra.mxu1 %vm631_vm2, %v862_v42  ;;  %3742 = vmatmul.mubr.msk.f32.gmra.mxu0 %vm631_vm2, %v618_v3 }
 0x2b5   : > { %3744 = vmatprep.mubr.msk.f32.mxu0 %vm631_vm2, %v619_v29 }
 0x2b7   : > { %v863_v43 = vpop.trf.xlu0 }
 0x2b8   : > { %3715 = vmatprep.mubr.msk.f32.mxu1 %vm631_vm2, %v863_v43  ;;  %3745 = vmatmul.mubr.msk.f32.gmra.mxu0 %vm631_vm2, %v620_v30  ;;  %v4618_v30 = vmov 0.0  }
 0x2b9   : > { %3747 = vmatprep.mubr.msk.f32.mxu0 %vm631_vm2, %v621_v31  ;;  %v4930_v31 = vsel %vm1302_vm3, 1.0, %v4618_v30 }
 0x2bb   : > { %v864_v44 = vpop.trf.xlu0 }
 0x2bc   : > { %3716 = vmatmul.mubr.msk.f32.gmra.mxu1 %vm631_vm2, %v864_v44  ;;  %3748 = vmatmul.mubr.msk.f32.gmra.mxu0 %vm631_vm2, %v622_v32  ;;  %v4936_v44 = vsel %vm1304_vm5, 1.0, %v4618_v30 }
 0x2bd   : > { %3750 = vmatprep.mubr.msk.f32.mxu0 %vm631_vm2, %v623_v33 }
 0x2bf   : > { %v865_v45 = vpop.trf.xlu0 }
 0x2c0   : > { %3718 = vmatprep.mubr.msk.f32.mxu1 %vm631_vm2, %v865_v45  ;;  %3751 = vmatmul.mubr.msk.f32.gmra.mxu0 %vm631_vm2, %v624_v34 }
 0x2c1   : > { %3753 = vmatprep.mubr.msk.f32.mxu0 %vm631_vm2, %v625_v35 }
 0x2c3   : > { %v866_v46 = vpop.trf.xlu0 }
 0x2c4   : > { %3719 = vmatmul.mubr.msk.f32.gmra.mxu1 %vm631_vm2, %v866_v46  ;;  %3754 = vmatmul.mubr.msk.f32.gmra.mxu0 %vm631_vm2, %v626_v36  ;;  %v4932_v36 = vsel %vm1303_vm4, 1.0, %v4618_v30 }
 0x2c5   : > { %3756 = vmatprep.mubr.msk.f32.mxu0 %vm631_vm2, %v627_v37  ;;  %v1366_v37 = vmul.f32 1e-05, %v4930_v31 }
 0x2c7   : > { %v867_v47 = vpop.trf.xlu0 }
 0x2c8   : > { %3721 = vmatprep.mubr.msk.f32.mxu1 %vm631_vm2, %v867_v47  ;;  %3757 = vmatmul.mubr.msk.f32.gmra.mxu0 %vm631_vm2, %v628_v38  ;;  %v1287_v38 = vadd.s32 24, %v4815_v2  ;;  %v1367_v47 = vmul.f32 1e-05, %v4932_v36 }
 0x2c9   : > { %3759 = vmatprep.mubr.msk.f32.mxu0 %vm631_vm2, %v629_v39 }
 0x2ca   : > { %vm1305_vm6 = vcmp.eq.s32.totalorder %v1287_v38, %v1301_v18 }
 0x2cb   : > { %v868_v48 = vpop.trf.xlu0 }
 0x2cc   : > { %3722 = vmatmul.mubr.msk.f32.gmra.mxu1 %vm631_vm2, %v868_v48  ;;  %3760 = vmatmul.mubr.msk.f32.gmra.mxu0 %vm631_vm2, %v630_v40 }
 0x2cf   : > { %v869_v49 = vpop.trf.xlu0 }
 0x2d0   : > { %3724 = vmatprep.mubr.msk.f32.mxu1 %vm631_vm2, %v869_v49  ;;  %v587_v49 = vld [vmem:[#allocation3 + $0x50] sm:$0xff] }
 0x2d3   : > { %v870_v50 = vpop.trf.xlu0 }
 0x2d4   : > { %3725 = vmatmul.mubr.msk.f32.gmra.mxu1 %vm631_vm2, %v870_v50 }
 0x2d7   : > { %v871_v51 = vpop.trf.xlu0 }
 0x2d8   : > { %3727 = vmatprep.mubr.msk.f32.mxu1 %vm631_vm2, %v871_v51  ;;  %v1368_v51 = vmul.f32 1e-05, %v4936_v44 }
 0x2db   : > { %v872_v52 = vpop.trf.xlu0 }
 0x2dc   : > { %3728 = vmatmul.mubr.msk.f32.gmra.mxu1 %vm631_vm2, %v872_v52 }
 0x2df   : > { %v873_v53 = vpop.trf.xlu0 }
 0x2e0   : > { %3730 = vmatprep.mubr.msk.f32.mxu1 %vm631_vm2, %v873_v53 }
 0x2e3   : > { %v874_v54 = vpop.trf.xlu0 }
 0x2e4   : > { %3731 = vmatmul.mubr.msk.f32.gmra.mxu1 %vm631_vm2, %v874_v54  ;;  %v1398_v54 = vld [vmem:[#allocation7] sm:$0xff] }
 0x2e7   : > { %v875_v55 = vpop.trf.xlu0 }
 0x2e8   : > { %3733 = vmatprep.mubr.msk.f32.mxu1 %vm631_vm2, %v875_v55 }
 0x2eb   : > { %v876_v56 = vpop.trf.xlu0 }
 0x2ec   : > { %3734 = vmatmul.mubr.msk.f32.gmra.mxu1 %vm631_vm2, %v876_v56 }
 0x334   : > { %v3688_v57 = vpop.f32.mrf.mxu0 }
 0x335   : > { %v830_v20 = vsub.f32 %v584_v15, %v3688_v57  ;;  %v588_v57 = vld [vmem:[#allocation3 + $0x68] sm:$0xff]  ;;  %v1414_v15 = vmul.f32 0.9, %v1398_v54 }
 0x336   : > { %v750_v58 = vpop.f32.mrf.mxu0 }
 0x337   : > { %v829_v17 = vsub.f32 %v583_v13, %v750_v58 }
 0x33c   : > { %v3691_v59 = vpop.f32.mrf.mxu0 }
 0x33d   : > { %v832_v35 = vsub.f32 %v586_v28, %v3691_v59 }
 0x33e   : > { %v760_v60 = vpop.f32.mrf.mxu0 }
 0x33f   : > { %v831_v33 = vsub.f32 %v585_v27, %v760_v60  ;;  %v4941_v60 = vsel %vm1305_vm6, 1.0, %v4618_v30 }
 0x344   : > { %v4902_v61 = vpop.f32.mrf.mxu0 }
 0x345   : > { %v834_v21 = vsub.f32 %v588_v57, %v4902_v61  ;;  %v1403_v57 = vld [vmem:[#allocation7 + $0x28] sm:$0xff] }
 0x346   : > { %v4904_v62 = vpop.f32.mrf.mxu0 }
 0x347   : > { %v833_v58 = vsub.f32 %v587_v49, %v4904_v62 }
 0x34c   : > { %v4906_v63 = vpop.f32.mrf.mxu0 }
 0x34e   : > { %v4908_v0 = vpop.f32.mrf.mxu0 }
 0x354   : > { %v4910_v4 = vpop.f32.mrf.mxu0 }
 0x356   : > { %v4912_v5 = vpop.f32.mrf.mxu0 }
 0x35c   : > { %v4914_v6 = vpop.f32.mrf.mxu0 }
 0x35e   : > { %v4916_v7 = vpop.f32.mrf.mxu0 }
 0x364   : > { %v4918_v8 = vpop.f32.mrf.mxu0 }
 0x366   : > { %v4920_v9 = vpop.f32.mrf.mxu0 }
 0x36c   : > { %v4922_v10 = vpop.f32.mrf.mxu0 }
 0x36e   : > { %v4924_v11 = vpop.f32.mrf.mxu0 }
 0x370   : > { %v3740_v12 = vpop.f32.mrf.mxu0 }
 0x371   : > { %v1235_v3 = vmul.f32 64.0, %v3740_v12  ;;  %v1399_v12 = vld [vmem:[#allocation7 + $0x8] sm:$0xff] }
 0x372   : > { %v1155_v14 = vpop.f32.mrf.mxu0  ;;  %v1415_v24 = vmul.f32 0.9, %v1399_v12 }
 0x373   : > { %v1234_v25 = vmul.f32 64.0, %v1155_v14 }
 0x374   : > { %v3714_v16 = vpop.f32.mrf.mxu1  ;;  %v3743_v22 = vpop.f32.mrf.mxu0 }
 0x375   : > { %v1074_v26 = vsub.f32 %v830_v20, %v3714_v16  ;;  %v1237_v50 = vmul.f32 64.0, %v3743_v22 }
 0x376   : > { %v994_v19 = vpop.f32.mrf.mxu1  ;;  %v1165_v1 = vpop.f32.mrf.mxu0 }
 0x377   : > { %v1073_v23 = vsub.f32 %v829_v17, %v994_v19  ;;  %v1251_v34 = vadd.f32 %v1235_v3, %v1074_v26  ;;  %v1236_v41 = vmul.f32 64.0, %v1165_v1  ;;  %v1400_v19 = vld [vmem:[#allocation7 + $0x10] sm:$0xff]  ;;  %v590_v3 = vld [vmem:[#allocation3 + $0x48] sm:$0xff] }
 0x378   : > { %v3746_v42 = vpop.f32.mrf.mxu0  ;;  %v1416_v26 = vmul.f32 0.9, %v1400_v19 }
 0x379   : > { %v1250_v29 = vadd.f32 %v1234_v25, %v1073_v23  ;;  %v1268_v46 = vmul.f32 0.015873017, %v1251_v34  ;;  %v1369_v23 = vmul.f32 1e-05, %v4941_v60  ;;  %v1401_v34 = vld [vmem:[#allocation7 + $0x18] sm:$0xff] }
 0x37a   : > { %v1175_v53 = vpop.f32.mrf.mxu0 }
 0x37b   : > { %v1267_v40 = vmul.f32 0.015873017, %v1250_v29  ;;  %v1383_v59 = vadd.f32 %v1367_v47, %v1268_v46  ;;  %v1238_v17 = vmul.f32 64.0, %v1175_v53  ;;  %v589_v29 = vld [vmem:[#allocation3 + $0x8] sm:$0xff]  ;;  %v1417_v47 = vmul.f32 0.9, %v1401_v34 }
 0x37c   : > { %v3717_v32 = vpop.f32.mrf.mxu1  ;;  %v3749_v18 = vpop.f32.mrf.mxu0  ;;  %v1405_v34 = vld [vmem:[#allocation7 + $0x38] sm:$0xff] }
 0x37d   : > { %v1076_v45 = vsub.f32 %v832_v35, %v3717_v32  ;;  %v1382_v52 = vadd.f32 %v1366_v37, %v1267_v40  ;;  %v1431_v25 = vmul.f32 0.1, %v1383_v59  ;;  %v1239_v32 = vmul.f32 64.0, %v3746_v42  ;;  %v1402_v37 = vld [vmem:[#allocation7 + $0x20] sm:$0xff]  ;;  %v1404_v59 = vld [vmem:[#allocation7 + $0x30] sm:$0xff] }
 0x37e   : > { %v1004_v39 = vpop.f32.mrf.mxu1  ;;  %v1185_v1 = vpop.f32.mrf.mxu0  ;;  %v835_v40 = vsub.f32 %v589_v29, %v4908_v0  ;;  %v1418_v49 = vmul.f32 0.9, %v1402_v37  ;;  %v591_v0 = vld [vmem:[#allocation3 + $0x40] sm:$0xff]  ;;  %v1241_v54 = vmul.f32 64.0, %v3749_v18  ;;  %v593_v37 = vld [vmem:[#allocation3 + $0x10] sm:$0xff] }
 0x37f   : > { %v1075_v43 = vsub.f32 %v831_v33, %v1004_v39  ;;  %v1253_v55 = vadd.f32 %v1237_v50, %v1076_v45  ;;  %v1430_v16 = vmul.f32 0.1, %v1382_v52  ;;  %v4947_v38 = vadd.f32 %v1431_v25, %v1415_v24  ;;  %v592_v50 = vld [vmem:[#allocation3 + $0x20] sm:$0xff] }
 0x380   : > { %v836_v39 = vsub.f32 %v590_v3, %v4906_v63  ;;  %v1240_v42 = vmul.f32 64.0, %v1185_v1  ;;  %v838_v12 = vsub.f32 %v592_v50, %v4910_v4  ;;  %v837_v18 = vsub.f32 %v591_v0, %v4912_v5  ;;  %v594_v3 = vld [vmem:[#allocation3 + $0x38] sm:$0xff] }
 0x381   : > { %v1252_v48 = vadd.f32 %v1236_v41, %v1075_v43  ;;  %v1270_v22 = vmul.f32 0.015873017, %v1253_v55  ;;  %v4945_v30 = vadd.f32 %v1430_v16, %v1414_v15  ;;  %v1463_v63 = vmul.f32 %v4947_v38, %v4932_v36 }
 0x383   : > { %v1269_v2 = vmul.f32 0.015873017, %v1252_v48  ;;  %v1385_v33 = vadd.f32 %v1369_v23, %v1270_v22  ;;  %v1462_v46 = vmul.f32 %v4945_v30, %v4930_v31  ;;  %v3752_v48 = vpop.f32.mrf.mxu0  ;;  %v1420_v22 = vmul.f32 0.9, %v1404_v59 }
 0x384   : > { %v3720_v56 = vpop.f32.mrf.mxu1  ;;  %v1243_v1 = vmul.f32 64.0, %v3752_v48 }
 0x385   : > { %v1384_v13 = vadd.f32 %v1368_v51, %v1269_v2  ;;  %v1078_v28 = vsub.f32 %v834_v21, %v3720_v56  ;;  %v1433_v51 = vmul.f32 0.1, %v1385_v33  ;;  %v1419_v21 = vmul.f32 0.9, %v1403_v57 }
 0x386   : > { %v1014_v14 = vpop.f32.mrf.mxu1 }
 0x387   : > { %v1077_v20 = vsub.f32 %v833_v58, %v1014_v14  ;;  %v1432_v27 = vmul.f32 0.1, %v1384_v13  ;;  %v1255_v43 = vadd.f32 %v1239_v32, %v1078_v28  ;;  %v1478_v13 = vadd.f32 %v1463_v63, %v1462_v46  ;;  %v1195_v14 = vpop.f32.mrf.mxu0 }
 0x388   : > { %v4960_v15 = vadd.f32 %v1433_v51, %v1417_v47 }
 0x389   : > { %v1254_v62 = vadd.f32 %v1238_v17, %v1077_v20  ;;  %v4951_v41 = vadd.f32 %v1432_v27, %v1416_v26  ;;  %v1272_v56 = vmul.f32 0.015873017, %v1255_v43  ;;  %v1242_v27 = vmul.f32 64.0, %v1195_v14  ;;  %v3755_v4 = vpop.f32.mrf.mxu0 }
 0x38a   : > { %v1465_v29 = vmul.f32 %v4960_v15, %v4941_v60 }
 0x38b   : > { %v1271_v35 = vmul.f32 0.015873017, %v1254_v62  ;;  %v1464_v55 = vmul.f32 %v4951_v41, %v4936_v44  ;;  %v1435_v24 = vmul.f32 0.1, %v1272_v56  ;;  %v1205_v46 = vpop.f32.mrf.mxu0  ;;  %v1245_v56 = vmul.f32 64.0, %v3755_v4 }
 0x38c   : > { %v3723_v61 = vpop.f32.mrf.mxu1  ;;  %v1244_v57 = vmul.f32 64.0, %v1205_v46  ;;  %v598_v46 = vld [vmem:[#allocation3 + $0x28] sm:$0xff] }
 0x38d   : > { %v1434_v52 = vmul.f32 0.1, %v1271_v35  ;;  %v1080_v53 = vsub.f32 %v836_v39, %v3723_v61  ;;  %v1479_v23 = vadd.f32 %v1478_v13, %v1464_v55  ;;  %v1406_v35 = vld [vmem:[#allocation7 + $0x40] sm:$0xff]  ;;  %v4968_v61 = vadd.f32 %v1435_v24, %v1419_v21 }
 0x38e   : > { %v1024_v45 = vpop.f32.mrf.mxu1  ;;  %v1422_v50 = vmul.f32 0.9, %v1406_v35  ;;  %v1409_v35 = vld [vmem:[#allocation7 + $0x58] sm:$0xff] }
 0x38f   : > { %v1079_v2 = vsub.f32 %v835_v40, %v1024_v45  ;;  %v4962_v16 = vadd.f32 %v1434_v52, %v1418_v49  ;;  %v1257_v17 = vadd.f32 %v1241_v54, %v1080_v53  ;;  %v1480_v39 = vadd.f32 %v1479_v23, %v1465_v29 }
 0x390   : > { %v840_v45 = vsub.f32 %v594_v3, %v4914_v6  ;;  %v1421_v49 = vmul.f32 0.9, %v1405_v34  ;;  %v839_v52 = vsub.f32 %v593_v37, %v4916_v7  ;;  %v1467_v63 = vmul.f32 0.0, %v4968_v61  ;;  %v3758_v6 = vpop.f32.mrf.mxu0  ;;  %v1408_v7 = vld [vmem:[#allocation7 + $0x50] sm:$0xff] }
 0x391   : > { %v1256_v58 = vadd.f32 %v1240_v42, %v1079_v2  ;;  %v1466_v32 = vmul.f32 0.0, %v4962_v16  ;;  %v1274_v33 = vmul.f32 0.015873017, %v1257_v17  ;;  %v1247_v29 = vmul.f32 64.0, %v3758_v6 }
 0x393   : > { %v1273_v19 = vmul.f32 0.015873017, %v1256_v58  ;;  %v1481_v42 = vadd.f32 %v1480_v39, %v1466_v32  ;;  %v1437_v48 = vmul.f32 0.1, %v1274_v33  ;;  %v1407_v58 = vld [vmem:[#allocation7 + $0x48] sm:$0xff] }
 0x394   : > { %v3726_v20 = vpop.f32.mrf.mxu1 }
 0x395   : > { %v1436_v25 = vmul.f32 0.1, %v1273_v19  ;;  %v1082_v62 = vsub.f32 %v838_v12, %v3726_v20  ;;  %v596_v12 = vld [vmem:[#allocation3 + $0x70] sm:$0xff]  ;;  %v4976_v13 = vadd.f32 %v1437_v48, %v1421_v49  ;;  %v1482_v14 = vadd.f32 %v1481_v42, %v1467_v63  ;;  %v595_v19 = vld [vmem:[#allocation3 + $0x60] sm:$0xff]  ;;  %v597_v49 = vld [vmem:[#allocation3 + $0x78] sm:$0xff] }
 0x396   : > { %v1034_v26 = vpop.f32.mrf.mxu1  ;;  %v842_v24 = vsub.f32 %v596_v12, %v4918_v8  ;;  %v1410_v42 = vld [vmem:[#allocation7 + $0x60] sm:$0xff]  ;;  %v1425_v48 = vmul.f32 0.9, %v1409_v35  ;;  %v844_v63 = vsub.f32 %v598_v46, %v4922_v10 }
 0x397   : > { %v1081_v28 = vsub.f32 %v837_v18, %v1034_v26  ;;  %v4970_v40 = vadd.f32 %v1436_v25, %v1420_v22  ;;  %v1259_v43 = vadd.f32 %v1243_v1, %v1082_v62  ;;  %v1423_v22 = vmul.f32 0.9, %v1407_v58  ;;  %v1215_v25 = vpop.f32.mrf.mxu0 }
 0x398   : > { %v1424_v26 = vmul.f32 0.9, %v1408_v7  ;;  %v1469_v4 = vmul.f32 0.0, %v4976_v13  ;;  %v1246_v8 = vmul.f32 64.0, %v1215_v25  ;;  %v1412_v25 = vld [vmem:[#allocation7 + $0x70] sm:$0xff] }
 0x399   : > { %v1258_v5 = vadd.f32 %v1242_v27, %v1081_v28  ;;  %v1468_v0 = vmul.f32 0.0, %v4970_v40  ;;  %v1276_v54 = vmul.f32 0.015873017, %v1259_v43  ;;  %v841_v27 = vsub.f32 %v595_v19, %v4920_v9  ;;  %v3761_v39 = vpop.f32.mrf.mxu0 }
 0x39b   : > { %v1275_v47 = vmul.f32 0.015873017, %v1258_v5  ;;  %v1483_v21 = vadd.f32 %v1482_v14, %v1468_v0  ;;  %v1439_v23 = vmul.f32 0.1, %v1276_v54  ;;  %v1225_v0 = vpop.f32.mrf.mxu0 }
 0x39c   : > { %v3729_v51 = vpop.f32.mrf.mxu1  ;;  %v1248_v19 = vmul.f32 64.0, %v1225_v0  ;;  %v1520_v0 = vmul.f32 3.0, %v4930_v31 }
 0x39d   : > { %v1438_v53 = vmul.f32 0.1, %v1275_v47  ;;  %v1084_v2 = vsub.f32 %v840_v45, %v3729_v51  ;;  %v4984_v34 = vadd.f32 %v1439_v23, %v1423_v22  ;;  %v1484_v5 = vadd.f32 %v1483_v21, %v1469_v4 }
 0x39e   : > { %v1044_v55 = vpop.f32.mrf.mxu1 }
 0x39f   : > { %v1083_v59 = vsub.f32 %v839_v52, %v1044_v55  ;;  %v4978_v17 = vadd.f32 %v1438_v53, %v1422_v50  ;;  %v1261_v20 = vadd.f32 %v1245_v56, %v1084_v2  ;;  %v1471_v52 = vmul.f32 0.0, %v4984_v34  ;;  %v1411_v2 = vld [vmem:[#allocation7 + $0x68] sm:$0xff] }
 0x3a0   : > { %v1426_v56 = vmul.f32 0.9, %v1410_v42 }
 0x3a1   : > { %v1260_v18 = vadd.f32 %v1244_v57, %v1083_v59  ;;  %v1470_v28 = vmul.f32 0.0, %v4978_v17  ;;  %v1278_v1 = vmul.f32 0.015873017, %v1261_v20  ;;  %v843_v57 = vsub.f32 %v597_v49, %v4924_v11 }
 0x3a2   : > { %v1249_v59 = vmul.f32 64.0, %v3761_v39 }
 0x3a3   : > { %v1277_v62 = vmul.f32 0.015873017, %v1260_v18  ;;  %v1485_v47 = vadd.f32 %v1484_v5, %v1470_v28  ;;  %v1441_v50 = vmul.f32 0.1, %v1278_v1  ;;  %v1427_v18 = vmul.f32 0.9, %v1411_v2 }
 0x3a4   : > { %v3732_v3 = vpop.f32.mrf.mxu1  ;;  %v1428_v28 = vmul.f32 0.9, %v1412_v25 }
 0x3a5   : > { %v1440_v32 = vmul.f32 0.1, %v1277_v62  ;;  %v1086_v33 = vsub.f32 %v842_v24, %v3732_v3  ;;  %v1486_v6 = vadd.f32 %v1485_v47, %v1471_v52  ;;  %v1457_v12 = vadd.f32 %v1441_v50, %v1425_v48  ;;  %v1413_v62 = vld [vmem:[#allocation7 + $0x78] sm:$0xff] }
 0x3a6   : > { %v1054_v37 = vpop.f32.mrf.mxu1  ;;  %v1429_v3 = vmul.f32 0.9, %v1413_v62 }
 0x3a7   : > { %v4986_v43 = vadd.f32 %v1440_v32, %v1424_v26  ;;  %v1263_v45 = vadd.f32 %v1247_v29, %v1086_v33  ;;  %v1085_v9 = vsub.f32 %v841_v27, %v1054_v37  ;;  %v1473_v26 = vmul.f32 0.0, %v1457_v12 }
 0x3a9   : > { %v1262_v51 = vadd.f32 %v1246_v8, %v1085_v9  ;;  %v1472_v53 = vmul.f32 0.0, %v4986_v43  ;;  %v1280_v54 = vmul.f32 0.015873017, %v1263_v45 }
 0x3ab   : > { %v1279_v55 = vmul.f32 0.015873017, %v1262_v51  ;;  %v1487_v20 = vadd.f32 %v1486_v6, %v1472_v53  ;;  %v1443_v22 = vmul.f32 0.1, %v1280_v54 }
 0x3ac   : > { %v3735_v58 = vpop.f32.mrf.mxu1 }
 0x3ad   : > { %v1442_v14 = vmul.f32 0.1, %v1279_v55  ;;  %v1088_v7 = vsub.f32 %v844_v63, %v3735_v58  ;;  %v1459_v29 = vadd.f32 %v1443_v22, %v1427_v18  ;;  %v1488_v33 = vadd.f32 %v1487_v20, %v1473_v26 }
 0x3ae   : > { %v1064_v21 = vpop.f32.mrf.mxu1 }
 0x3af   : > { %v1458_v23 = vadd.f32 %v1442_v14, %v1426_v56  ;;  %v1265_v24 = vadd.f32 %v1249_v59, %v1088_v7  ;;  %v1087_v10 = vsub.f32 %v843_v57, %v1064_v21  ;;  %v1475_v39 = vmul.f32 0.0, %v1459_v29 }
 0x3b1   : > { %v1474_v27 = vmul.f32 0.0, %v1458_v23  ;;  %v1282_v4 = vmul.f32 0.015873017, %v1265_v24  ;;  %v1264_v11 = vadd.f32 %v1248_v19, %v1087_v10 }
 0x3b3   : > { %v1445_v1 = vmul.f32 0.1, %v1282_v4  ;;  %v1281_v32 = vmul.f32 0.015873017, %v1264_v11  ;;  %v1489_v35 = vadd.f32 %v1488_v33, %v1474_v27 }
 0x3b5   : > { %v1444_v5 = vmul.f32 0.1, %v1281_v32  ;;  %v1461_v8 = vadd.f32 %v1445_v1, %v1429_v3  ;;  %v1490_v9 = vadd.f32 %v1489_v35, %v1475_v39 }
 0x3b7   : > { %v1460_v37 = vadd.f32 %v1444_v5, %v1428_v28  ;;  %v1477_v46 = vmul.f32 0.0, %v1461_v8 }
 0x3b9   : > { %v1476_v45 = vmul.f32 0.0, %v1460_v37 }
 0x3bb   : > { %v1491_v47 = vadd.f32 %v1490_v9, %v1476_v45 }
 0x3bd   : > { %v1492_v42 = vadd.f32 %v1491_v47, %v1477_v46 }
 0x3bf   : > { %1493 = vadd.xlane.f32.xlu1 %v1492_v42 }
 0x448   : > { %v1494_v49 = vpop.xlane.xlu1 %1493 }
 0x449   : > { %v1495_v48 = vrot.slane %v1494_v49, 4 }
 0x44b   : > { %v1496_v50 = vadd.f32 %v1495_v48, %v1494_v49 }
 0x44d   : > { %v1497_v51 = vrot.slane %v1496_v50, 2 }
 0x44f   : > { %v1498_v52 = vadd.f32 %v1497_v51, %v1496_v50 }
 0x451   : > { %v1499_v53 = vrot.slane %v1498_v52, 1 }
 0x453   : > { %v1500_v2 = vadd.f32 %v1499_v53, %v1498_v52 }
 0x455   : > { %4270 = vpush %v1500_v2 }
 0x486   : > { %s4271_s21 = spop %4270 }
 0x487   : > { %v1502_v63 = vstv %s4271_s21 }
 0x488   : > { %4399 = vrcp.f32 %v1502_v63 }
 0x489   : > { %4401 = vrsqrt.f32 %v1502_v63 }
 0x495   : > { %v4993_v54 = vpop.eup %4399 }
 0x496   : > { %v4402_v55 = vpop.eup %4401  ;;  %v4996_v56 = vmul.f32 %v4993_v54, %v1461_v8  ;;  %v5000_v57 = vmul.f32 %v4993_v54, %v4945_v30  ;;  %v5003_v6 = vmul.f32 %v4993_v54, %v1460_v37  ;;  %v5006_v58 = vmul.f32 %v4993_v54, %v1459_v29 }
 0x497   : > { %4272 = vpush %v4402_v55  ;;  %v5012_v7 = vmul.f32 %v4993_v54, %v1458_v23  ;;  %v5020_v18 = vmul.f32 %v4993_v54, %v1457_v12  ;;  %v5029_v23 = vmul.f32 %v4993_v54, %v4986_v43  ;;  %v5040_v10 = vmul.f32 %v4993_v54, %v4984_v34 }
 0x498   : > { %v1551_v59 = vsub.f32 0.0, %v4996_v56  ;;  %v1536_v31 = vsub.f32 %v1520_v0, %v5000_v57  ;;  %v1550_v14 = vsub.f32 0.0, %v5003_v6  ;;  %v1549_v20 = vsub.f32 0.0, %v5006_v58 }
 0x499   : > { %v1548_v22 = vsub.f32 0.0, %v5012_v7  ;;  %v1547_v24 = vsub.f32 0.0, %v5020_v18  ;;  %v1546_v25 = vsub.f32 0.0, %v5029_v23  ;;  %v5051_v62 = vmul.f32 %v4993_v54, %v4978_v17 }
 0x49a   : > { %v5014_v19 = vmul.f32 0.5, %v1551_v59  ;;  %v5016_v30 = vmul.f32 0.5, %v1536_v31  ;;  %v5024_v21 = vmul.f32 0.5, %v1550_v14  ;;  %v5035_v12 = vmul.f32 0.5, %v1549_v20 }
 0x49b   : > { %v5046_v43 = vmul.f32 0.5, %v1548_v22  ;;  %v5057_v34 = vmul.f32 0.5, %v1547_v24  ;;  %v1545_v26 = vsub.f32 0.0, %v5040_v10  ;;  %v5062_v27 = vmul.f32 %v4993_v54, %v4976_v13 }
 0x49c   : > { %3762 = vmatprep.subr.mxu1 %v5014_v19  ;;  %3794 = vmatprep.mubr.f32.mxu1 %v5016_v30  ;;  %v5068_v17 = vmul.f32 0.5, %v1546_v25  ;;  %v1544_v4 = vsub.f32 0.0, %v5051_v62  ;;  %v5073_v11 = vmul.f32 %v4993_v54, %v4970_v40  ;;  %v5084_v3 = vmul.f32 %v4993_v54, %v4968_v61 }
 0x49d   : > { %3818 = vmatprep.subr.mxu0 %v5014_v19  ;;  %3763 = vmatpush3.msra.mxu1 %v5014_v19  ;;  %v5079_v13 = vmul.f32 0.5, %v1545_v26  ;;  %v1543_v28 = vsub.f32 0.0, %v5062_v27  ;;  %v5095_v1 = vmul.f32 %v4993_v54, %v4962_v16  ;;  %v1523_v61 = vmul.f32 3.0, %v4941_v60 }
 0x49e   : > { %3819 = vmatpush3.msra.mxu0 %v5014_v19  ;;  %3764 = vmatprep.subr.mxu1 %v5024_v21  ;;  %v5090_v40 = vmul.f32 0.5, %v1544_v4  ;;  %v1542_v29 = vsub.f32 0.0, %v5073_v11  ;;  %v1541_v33 = vsub.f32 0.0, %v5084_v3  ;;  %v5107_v5 = vmul.f32 %v4993_v54, %v4960_v15 }
 0x49f   : > { %3820 = vmatprep.subr.mxu0 %v5024_v21  ;;  %3765 = vmatpush3.msra.mxu1 %v5024_v21  ;;  %v5102_v32 = vmul.f32 0.5, %v1543_v28  ;;  %v1522_v16 = vmul.f32 3.0, %v4936_v44  ;;  %v1540_v35 = vsub.f32 0.0, %v5095_v1  ;;  %v5119_v37 = vmul.f32 %v4993_v54, %v4951_v41 }
 0x4a0   : > { %3821 = vmatpush3.msra.mxu0 %v5024_v21  ;;  %3766 = vmatprep.subr.mxu1 %v5035_v12  ;;  %v5114_v60 = vmul.f32 0.5, %v1542_v29  ;;  %v1521_v15 = vmul.f32 3.0, %v4932_v36  ;;  %v5126_v44 = vmul.f32 0.5, %v1541_v33  ;;  %v1539_v8 = vsub.f32 %v1523_v61, %v5107_v5 }
 0x4a1   : > { %3822 = vmatprep.subr.mxu0 %v5035_v12  ;;  %3767 = vmatpush3.msra.mxu1 %v5035_v12  ;;  %v5131_v39 = vmul.f32 %v4993_v54, %v4947_v38  ;;  %v5137_v36 = vmul.f32 0.5, %v1540_v35  ;;  %v1538_v41 = vsub.f32 %v1522_v16, %v5119_v37 }
 0x4a2   : > { %3823 = vmatpush3.msra.mxu0 %v5035_v12  ;;  %3768 = vmatprep.subr.mxu1 %v5046_v43  ;;  %v5144_v38 = vmul.f32 0.5, %v1539_v8 }
 0x4a3   : > { %3824 = vmatprep.subr.mxu0 %v5046_v43  ;;  %3769 = vmatpush3.msra.mxu1 %v5046_v43  ;;  %v1537_v45 = vsub.f32 %v1521_v15, %v5131_v39  ;;  %v5151_v9 = vmul.f32 0.5, %v1538_v41 }
 0x4a4   : > { %3825 = vmatpush3.msra.mxu0 %v5046_v43  ;;  %3770 = vmatprep.subr.mxu1 %v5057_v34 }
 0x4a5   : > { %3826 = vmatprep.subr.mxu0 %v5057_v34  ;;  %3771 = vmatpush3.msra.mxu1 %v5057_v34  ;;  %v5157_v46 = vmul.f32 0.5, %v1537_v45 }
 0x4a6   : > { %3827 = vmatpush3.msra.mxu0 %v5057_v34  ;;  %3772 = vmatprep.subr.mxu1 %v5068_v17 }
 0x4a7   : > { %3828 = vmatprep.subr.mxu0 %v5068_v17  ;;  %3773 = vmatpush3.msra.mxu1 %v5068_v17 }
 0x4a8   : > { %3829 = vmatpush3.msra.mxu0 %v5068_v17  ;;  %3774 = vmatprep.subr.mxu1 %v5079_v13 }
 0x4a9   : > { %3830 = vmatprep.subr.mxu0 %v5079_v13  ;;  %3775 = vmatpush3.msra.mxu1 %v5079_v13 }
 0x4aa   : > { %3831 = vmatpush3.msra.mxu0 %v5079_v13  ;;  %3776 = vmatprep.subr.mxu1 %v5090_v40 }
 0x4ab   : > { %3832 = vmatprep.subr.mxu0 %v5090_v40  ;;  %3777 = vmatpush3.msra.mxu1 %v5090_v40 }
 0x4ac   : > { %3833 = vmatpush3.msra.mxu0 %v5090_v40  ;;  %3778 = vmatprep.subr.mxu1 %v5102_v32 }
 0x4ad   : > { %3834 = vmatprep.subr.mxu0 %v5102_v32  ;;  %3779 = vmatpush3.msra.mxu1 %v5102_v32 }
 0x4ae   : > { %3835 = vmatpush3.msra.mxu0 %v5102_v32  ;;  %3780 = vmatprep.subr.mxu1 %v5114_v60 }
 0x4af   : > { %3836 = vmatprep.subr.mxu0 %v5114_v60  ;;  %3781 = vmatpush3.msra.mxu1 %v5114_v60 }
 0x4b0   : > { %3837 = vmatpush3.msra.mxu0 %v5114_v60  ;;  %3782 = vmatprep.subr.mxu1 %v5126_v44 }
 0x4b1   : > { %3838 = vmatprep.subr.mxu0 %v5126_v44  ;;  %3783 = vmatpush3.msra.mxu1 %v5126_v44 }
 0x4b2   : > { %3839 = vmatpush3.msra.mxu0 %v5126_v44  ;;  %3784 = vmatprep.subr.mxu1 %v5137_v36 }
 0x4b3   : > { %3840 = vmatprep.subr.mxu0 %v5137_v36  ;;  %3785 = vmatpush3.msra.mxu1 %v5137_v36 }
 0x4b4   : > { %3841 = vmatpush3.msra.mxu0 %v5137_v36  ;;  %3786 = vmatprep.subr.mxu1 %v5144_v38 }
 0x4b5   : > { %3842 = vmatprep.subr.mxu0 %v5144_v38  ;;  %3787 = vmatpush3.msra.mxu1 %v5144_v38 }
 0x4b6   : > { %3843 = vmatpush3.msra.mxu0 %v5144_v38  ;;  %3788 = vmatprep.subr.mxu1 %v5151_v9 }
 0x4b7   : > { %3844 = vmatprep.subr.mxu0 %v5151_v9  ;;  %3789 = vmatpush3.msra.mxu1 %v5151_v9 }
 0x4b8   : > { %3845 = vmatpush3.msra.mxu0 %v5151_v9  ;;  %3790 = vmatprep.subr.mxu1 %v5157_v46 }
 0x4b9   : > { %3846 = vmatprep.subr.mxu0 %v5157_v46  ;;  %3791 = vmatpush3.msra.mxu1 %v5157_v46 }
 0x4ba   : > { %3847 = vmatpush3.msra.mxu0 %v5157_v46  ;;  %3792 = vmatprep.subr.mxu1 %v5016_v30 }
 0x4bb   : > { %3848 = vmatprep.subr.mxu0 %v5016_v30  ;;  %3793 = vmatpush3.msra.mxu1 %v5016_v30 }
 0x4bc   : > { %3849 = vmatpush3.msra.mxu0 %v5016_v30  ;;  %3795 = vmatmul.mubr.f32.vlgmr.msra.gmra.mxu1 %v5157_v46 }
 0x4bd   : > { %3874 = vmatprep.subr.mxu1 %v4996_v56  ;;  %3797 = vmatprep.mubr.f32.mxu1 %v5151_v9 }
 0x4be   : > { %3875 = vmatpush3.msra.mxu1 %v4996_v56 }
 0x4bf   : > { %3876 = vmatprep.subr.mxu1 %v5003_v6 }
 0x4c0   : > { %3877 = vmatpush3.msra.mxu1 %v5003_v6 }
 0x4c1   : > { %3798 = vmatmul.mubr.f32.gmra.mxu1 %v5144_v38  ;;  %3878 = vmatprep.subr.mxu1 %v5006_v58 }
 0x4c2   : > { %3800 = vmatprep.mubr.f32.mxu1 %v5137_v36  ;;  %3879 = vmatpush3.msra.mxu1 %v5006_v58 }
 0x4c3   : > { %3880 = vmatprep.subr.mxu1 %v5012_v7 }
 0x4c4   : > { %3881 = vmatpush3.msra.mxu1 %v5012_v7 }
 0x4c5   : > { %3801 = vmatmul.mubr.f32.gmra.mxu1 %v5126_v44  ;;  %3882 = vmatprep.subr.mxu1 %v5020_v18 }
 0x4c6   : > { %3803 = vmatprep.mubr.f32.mxu1 %v5114_v60  ;;  %3883 = vmatpush3.msra.mxu1 %v5020_v18 }
 0x4c7   : > { %3884 = vmatprep.subr.mxu1 %v5029_v23 }
 0x4c8   : > { %3885 = vmatpush3.msra.mxu1 %v5029_v23  ;;  %s4273_s29 = spop %4272 }
 0x4c9   : > { %3804 = vmatmul.mubr.f32.gmra.mxu1 %v5102_v32  ;;  %3886 = vmatprep.subr.mxu1 %v5040_v10 }
 0x4ca   : > { %3806 = vmatprep.mubr.f32.mxu1 %v5090_v40  ;;  %3887 = vmatpush3.msra.mxu1 %v5040_v10 }
 0x4cb   : > { %3888 = vmatprep.subr.mxu1 %v5051_v62 }
 0x4cc   : > { %3889 = vmatpush3.msra.mxu1 %v5051_v62 }
 0x4cd   : > { %3807 = vmatmul.mubr.f32.gmra.mxu1 %v5079_v13  ;;  %3890 = vmatprep.subr.mxu1 %v5062_v27 }
 0x4ce   : > { %3809 = vmatprep.mubr.f32.mxu1 %v5068_v17  ;;  %3891 = vmatpush3.msra.mxu1 %v5062_v27 }
 0x4cf   : > { %3892 = vmatprep.subr.mxu1 %v5073_v11 }
 0x4d0   : > { %3893 = vmatpush3.msra.mxu1 %v5073_v11 }
 0x4d1   : > { %3810 = vmatmul.mubr.f32.gmra.mxu1 %v5057_v34  ;;  %3894 = vmatprep.subr.mxu1 %v5084_v3 }
 0x4d2   : > { %3812 = vmatprep.mubr.f32.mxu1 %v5046_v43  ;;  %3895 = vmatpush3.msra.mxu1 %v5084_v3 }
 0x4d3   : > { %3896 = vmatprep.subr.mxu1 %v5095_v1 }
 0x4d4   : > { %3897 = vmatpush3.msra.mxu1 %v5095_v1 }
 0x4d5   : > { %3813 = vmatmul.mubr.f32.gmra.mxu1 %v5035_v12  ;;  %3898 = vmatprep.subr.mxu1 %v5107_v5 }
 0x4d6   : > { %3815 = vmatprep.mubr.f32.mxu1 %v5024_v21  ;;  %3899 = vmatpush3.msra.mxu1 %v5107_v5 }
 0x4d7   : > { %3900 = vmatprep.subr.mxu1 %v5119_v37 }
 0x4d8   : > { %3901 = vmatpush3.msra.mxu1 %v5119_v37 }
 0x4d9   : > { %3816 = vmatmul.mubr.f32.gmra.mxu1 %v5014_v19  ;;  %3902 = vmatprep.subr.mxu1 %v5131_v39 }
 0x4da   : > { %3903 = vmatpush3.msra.mxu1 %v5131_v39 }
 0x4db   : > { %3904 = vmatprep.subr.mxu1 %v5000_v57 }
 0x4dc   : > { %3905 = vmatpush3.msra.mxu1 %v5000_v57 }
 0x57c   : > { %v3796_v47 = vpop.f32.mrf.mxu1 }
 0x57e   : > { %v1634_v42 = vpop.f32.mrf.mxu1 }
 0x57f   : > { %3850 = vmatprep.mubr.f32.mxu0 %v1634_v42  ;;  %v1858_v42 = vmul.f32 3.0, %v5016_v30 }
 0x580   : > { %3851 = vmatmul.mubr.f32.vlgmr.msra.gmra.mxu0 %v3796_v47 }
 0x581   : > { %v3799_v49 = vpop.f32.mrf.mxu1 }
 0x583   : > { %v1644_v48 = vpop.f32.mrf.mxu1 }
 0x584   : > { %3853 = vmatprep.mubr.f32.mxu0 %v1644_v48 }
 0x585   : > { %v3802_v50 = vpop.f32.mrf.mxu1  ;;  %3854 = vmatmul.mubr.f32.gmra.mxu0 %v3799_v49 }
 0x587   : > { %v1654_v51 = vpop.f32.mrf.mxu1 }
 0x588   : > { %3856 = vmatprep.mubr.f32.mxu0 %v1654_v51 }
 0x589   : > { %v3805_v52 = vpop.f32.mrf.mxu1  ;;  %3857 = vmatmul.mubr.f32.gmra.mxu0 %v3802_v50 }
 0x58b   : > { %v1664_v53 = vpop.f32.mrf.mxu1 }
 0x58c   : > { %3859 = vmatprep.mubr.f32.mxu0 %v1664_v53 }
 0x58d   : > { %v3808_v2 = vpop.f32.mrf.mxu1  ;;  %3860 = vmatmul.mubr.f32.gmra.mxu0 %v3805_v52 }
 0x58f   : > { %v1674_v63 = vpop.f32.mrf.mxu1 }
 0x590   : > { %3862 = vmatprep.mubr.f32.mxu0 %v1674_v63 }
 0x591   : > { %v3811_v0 = vpop.f32.mrf.mxu1  ;;  %3863 = vmatmul.mubr.f32.gmra.mxu0 %v3808_v2 }
 0x593   : > { %v1684_v54 = vpop.f32.mrf.mxu1 }
 0x594   : > { %3865 = vmatprep.mubr.f32.mxu0 %v1684_v54 }
 0x595   : > { %v3814_v55 = vpop.f32.mrf.mxu1  ;;  %3866 = vmatmul.mubr.f32.gmra.mxu0 %v3811_v0 }
 0x597   : > { %v1694_v59 = vpop.f32.mrf.mxu1 }
 0x598   : > { %3868 = vmatprep.mubr.f32.mxu0 %v1694_v59 }
 0x599   : > { %v3817_v31 = vpop.f32.mrf.mxu1  ;;  %3869 = vmatmul.mubr.f32.gmra.mxu0 %v3814_v55 }
 0x59b   : > { %v1704_v14 = vpop.f32.mrf.mxu1 }
 0x59c   : > { %3871 = vmatprep.mubr.f32.mxu0 %v1704_v14 }
 0x59d   : > { %3872 = vmatmul.mubr.f32.gmra.mxu0 %v3817_v31 }
 0x640   : > { %v3852_v20 = vpop.f32.mrf.mxu0 }
 0x642   : > { %v1779_v22 = vpop.f32.mrf.mxu0 }
 0x643   : > { %3906 = vmatprep.mubr.f32.mxu1 %v1779_v22 }
 0x644   : > { %3907 = vmatmul.mubr.f32.vlgmr.msra.gmra.mxu1 %v3852_v20  ;;  %v1873_v20 = vmul.f32 3.0, %v5014_v19 }
 0x645   : > { %v3855_v24 = vpop.f32.mrf.mxu0 }
 0x647   : > { %v1789_v25 = vpop.f32.mrf.mxu0 }
 0x648   : > { %3909 = vmatprep.mubr.f32.mxu1 %v1789_v25 }
 0x649   : > { %v3858_v26 = vpop.f32.mrf.mxu0  ;;  %3910 = vmatmul.mubr.f32.gmra.mxu1 %v3855_v24  ;;  %v1871_v24 = vmul.f32 3.0, %v5035_v12 }
 0x64b   : > { %v1799_v4 = vpop.f32.mrf.mxu0 }
 0x64c   : > { %3912 = vmatprep.mubr.f32.mxu1 %v1799_v4 }
 0x64d   : > { %v3861_v28 = vpop.f32.mrf.mxu0  ;;  %3913 = vmatmul.mubr.f32.gmra.mxu1 %v3858_v26  ;;  %v1872_v26 = vmul.f32 3.0, %v5024_v21  ;;  %v1868_v21 = vmul.f32 3.0, %v5068_v17 }
 0x64f   : > { %v1809_v29 = vpop.f32.mrf.mxu0 }
 0x650   : > { %3915 = vmatprep.mubr.f32.mxu1 %v1809_v29  ;;  %v1870_v29 = vmul.f32 3.0, %v5046_v43  ;;  %v1867_v43 = vmul.f32 3.0, %v5079_v13  ;;  %v1865_v13 = vmul.f32 3.0, %v5102_v32  ;;  %v1863_v32 = vmul.f32 3.0, %v5126_v44 }
 0x651   : > { %v3864_v61 = vpop.f32.mrf.mxu0  ;;  %3916 = vmatmul.mubr.f32.gmra.mxu1 %v3861_v28  ;;  %v1861_v44 = vmul.f32 3.0, %v5144_v38  ;;  %v1859_v38 = vmul.f32 3.0, %v5157_v46 }
 0x653   : > { %v1819_v33 = vpop.f32.mrf.mxu0 }
 0x654   : > { %3918 = vmatprep.mubr.f32.mxu1 %v1819_v33 }
 0x655   : > { %v3867_v16 = vpop.f32.mrf.mxu0  ;;  %3919 = vmatmul.mubr.f32.gmra.mxu1 %v3864_v61 }
 0x657   : > { %v1829_v35 = vpop.f32.mrf.mxu0 }
 0x658   : > { %3921 = vmatprep.mubr.f32.mxu1 %v1829_v35 }
 0x659   : > { %v3870_v15 = vpop.f32.mrf.mxu0  ;;  %3922 = vmatmul.mubr.f32.gmra.mxu1 %v3867_v16  ;;  %v1869_v16 = vmul.f32 3.0, %v5057_v34 }
 0x65b   : > { %v1839_v8 = vpop.f32.mrf.mxu0 }
 0x65c   : > { %3924 = vmatprep.mubr.f32.mxu1 %v1839_v8 }
 0x65d   : > { %v3873_v41 = vpop.f32.mrf.mxu0  ;;  %3925 = vmatmul.mubr.f32.gmra.mxu1 %v3870_v15 }
 0x65f   : > { %v1849_v45 = vpop.f32.mrf.mxu0 }
 0x660   : > { %3927 = vmatprep.mubr.f32.mxu1 %v1849_v45 }
 0x661   : > { %3928 = vmatmul.mubr.f32.gmra.mxu1 %v3873_v41  ;;  %v1866_v41 = vmul.f32 3.0, %v5090_v40 }
 0x704   : > { %v5217_v47 = vpop.f32.mrf.mxu1 }
 0x706   : > { %v1940_v49 = vpop.f32.mrf.mxu1 }
 0x707   : > { %v2019_v48 = vsub.f32 %v1858_v42, %v1940_v49 }
 0x709   : > { %v5220_v50 = vmul.f32 0.5, %v2019_v48  ;;  %v5222_v51 = vpop.f32.mrf.mxu1  ;;  %v1864_v48 = vmul.f32 3.0, %v5114_v60 }
 0x70b   : > { %v5224_v52 = vpop.f32.mrf.mxu1  ;;  %3962 = vmatprep.mubr.f32.mxu0 %v5220_v50 }
 0x70d   : > { %v5227_v53 = vpop.f32.mrf.mxu1 }
 0x70e   : > { %v2024_v60 = vsub.f32 %v1863_v32, %v5227_v53  ;;  %v1860_v53 = vmul.f32 3.0, %v5151_v9  ;;  %v2020_v9 = vsub.f32 %v1859_v38, %v5217_v47 }
 0x70f   : > { %v5229_v2 = vpop.f32.mrf.mxu1 }
 0x710   : > { %v5337_v47 = vmul.f32 0.5, %v2020_v9 }
 0x711   : > { %v5231_v63 = vpop.f32.mrf.mxu1 }
 0x712   : > { %v2026_v40 = vsub.f32 %v1865_v13, %v5231_v63  ;;  %v1862_v63 = vmul.f32 3.0, %v5137_v36  ;;  %v2022_v36 = vsub.f32 %v1861_v44, %v5222_v51 }
 0x713   : > { %v5233_v0 = vpop.f32.mrf.mxu1 }
 0x714   : > { %v5325_v51 = vmul.f32 0.5, %v2022_v36 }
 0x715   : > { %v3920_v54 = vpop.f32.mrf.mxu1 }
 0x716   : > { %v2028_v17 = vsub.f32 %v1867_v43, %v3920_v54 }
 0x717   : > { %v1980_v30 = vpop.f32.mrf.mxu1 }
 0x718   : > { %v2027_v42 = vsub.f32 %v1866_v41, %v1980_v30  ;;  %v5278_v54 = vmul.f32 0.5, %v2028_v17  ;;  %v2025_v30 = vsub.f32 %v1864_v48, %v5233_v0  ;;  %v2023_v0 = vsub.f32 %v1862_v63, %v5229_v2 }
 0x719   : > { %v3923_v55 = vpop.f32.mrf.mxu1  ;;  %v2021_v2 = vsub.f32 %v1860_v53, %v5224_v52 }
 0x71a   : > { %v2030_v19 = vsub.f32 %v1869_v16, %v3923_v55  ;;  %v5286_v55 = vmul.f32 0.5, %v2027_v42 }
 0x71b   : > { %v1990_v59 = vpop.f32.mrf.mxu1  ;;  %v5331_v46 = vmul.f32 0.5, %v2021_v2 }
 0x71c   : > { %v2029_v34 = vsub.f32 %v1868_v21, %v1990_v59  ;;  %v5263_v45 = vmul.f32 0.5, %v2030_v19  ;;  %v5294_v59 = vmul.f32 0.5, %v2026_v40 }
 0x71d   : > { %v3926_v31 = vpop.f32.mrf.mxu1 }
 0x71e   : > { %v2032_v28 = vsub.f32 %v1871_v24, %v3926_v31  ;;  %v5270_v49 = vmul.f32 0.5, %v2029_v34  ;;  %v5302_v31 = vmul.f32 0.5, %v2025_v30 }
 0x71f   : > { %v2000_v14 = vpop.f32.mrf.mxu1 }
 0x720   : > { %v2031_v35 = vsub.f32 %v1870_v29, %v2000_v14  ;;  %v5249_v12 = vmul.f32 0.5, %v2032_v28  ;;  %v5310_v14 = vmul.f32 0.5, %v2024_v60 }
 0x721   : > { %v3929_v22 = vpop.f32.mrf.mxu1 }
 0x722   : > { %v2034_v25 = vsub.f32 %v1873_v20, %v3929_v22  ;;  %v5256_v8 = vmul.f32 0.5, %v2031_v35  ;;  %v5318_v20 = vmul.f32 0.5, %v2023_v0 }
 0x723   : > { %v2010_v4 = vpop.f32.mrf.mxu1 }
 0x724   : > { %v5239_v61 = vmul.f32 0.5, %v2034_v25  ;;  %v2033_v33 = vsub.f32 %v1872_v26, %v2010_v4 }
 0x726   : > { %v5242_v15 = vmul.f32 0.5, %v2033_v33  ;;  %3930 = vmatprep.subr.mxu0 %v5239_v61  ;;  %3986 = vmatprep.subr.mxu1 %v5239_v61 }
 0x727   : > { %3931 = vmatpush3.msra.mxu0 %v5239_v61  ;;  %3987 = vmatpush3.msra.mxu1 %v5239_v61 }
 0x728   : > { %3932 = vmatprep.subr.mxu0 %v5242_v15  ;;  %3988 = vmatprep.subr.mxu1 %v5242_v15 }
 0x729   : > { %3933 = vmatpush3.msra.mxu0 %v5242_v15  ;;  %3989 = vmatpush3.msra.mxu1 %v5242_v15 }
 0x72a   : > { %3934 = vmatprep.subr.mxu0 %v5249_v12  ;;  %3990 = vmatprep.subr.mxu1 %v5249_v12 }
 0x72b   : > { %3935 = vmatpush3.msra.mxu0 %v5249_v12  ;;  %3991 = vmatpush3.msra.mxu1 %v5249_v12 }
 0x72c   : > { %3936 = vmatprep.subr.mxu0 %v5256_v8  ;;  %3992 = vmatprep.subr.mxu1 %v5256_v8 }
 0x72d   : > { %3937 = vmatpush3.msra.mxu0 %v5256_v8  ;;  %3993 = vmatpush3.msra.mxu1 %v5256_v8 }
 0x72e   : > { %3938 = vmatprep.subr.mxu0 %v5263_v45  ;;  %3994 = vmatprep.subr.mxu1 %v5263_v45 }
 0x72f   : > { %3939 = vmatpush3.msra.mxu0 %v5263_v45  ;;  %3995 = vmatpush3.msra.mxu1 %v5263_v45 }
 0x730   : > { %3940 = vmatprep.subr.mxu0 %v5270_v49  ;;  %3996 = vmatprep.subr.mxu1 %v5270_v49 }
 0x731   : > { %3941 = vmatpush3.msra.mxu0 %v5270_v49  ;;  %3997 = vmatpush3.msra.mxu1 %v5270_v49 }
 0x732   : > { %3942 = vmatprep.subr.mxu0 %v5278_v54  ;;  %3998 = vmatprep.subr.mxu1 %v5278_v54 }
 0x733   : > { %3943 = vmatpush3.msra.mxu0 %v5278_v54  ;;  %3999 = vmatpush3.msra.mxu1 %v5278_v54 }
 0x734   : > { %3944 = vmatprep.subr.mxu0 %v5286_v55  ;;  %4000 = vmatprep.subr.mxu1 %v5286_v55 }
 0x735   : > { %3945 = vmatpush3.msra.mxu0 %v5286_v55  ;;  %4001 = vmatpush3.msra.mxu1 %v5286_v55 }
 0x736   : > { %3946 = vmatprep.subr.mxu0 %v5294_v59  ;;  %4002 = vmatprep.subr.mxu1 %v5294_v59 }
 0x737   : > { %3947 = vmatpush3.msra.mxu0 %v5294_v59  ;;  %4003 = vmatpush3.msra.mxu1 %v5294_v59 }
 0x738   : > { %3948 = vmatprep.subr.mxu0 %v5302_v31  ;;  %4004 = vmatprep.subr.mxu1 %v5302_v31 }
 0x739   : > { %3949 = vmatpush3.msra.mxu0 %v5302_v31  ;;  %4005 = vmatpush3.msra.mxu1 %v5302_v31 }
 0x73a   : > { %3950 = vmatprep.subr.mxu0 %v5310_v14  ;;  %4006 = vmatprep.subr.mxu1 %v5310_v14 }
 0x73b   : > { %3951 = vmatpush3.msra.mxu0 %v5310_v14  ;;  %4007 = vmatpush3.msra.mxu1 %v5310_v14 }
 0x73c   : > { %3952 = vmatprep.subr.mxu0 %v5318_v20  ;;  %4008 = vmatprep.subr.mxu1 %v5318_v20 }
 0x73d   : > { %3953 = vmatpush3.msra.mxu0 %v5318_v20  ;;  %4009 = vmatpush3.msra.mxu1 %v5318_v20 }
 0x73e   : > { %3954 = vmatprep.subr.mxu0 %v5325_v51  ;;  %4010 = vmatprep.subr.mxu1 %v5325_v51 }
 0x73f   : > { %3955 = vmatpush3.msra.mxu0 %v5325_v51  ;;  %4011 = vmatpush3.msra.mxu1 %v5325_v51 }
 0x740   : > { %3956 = vmatprep.subr.mxu0 %v5331_v46  ;;  %4012 = vmatprep.subr.mxu1 %v5331_v46 }
 0x741   : > { %3957 = vmatpush3.msra.mxu0 %v5331_v46  ;;  %4013 = vmatpush3.msra.mxu1 %v5331_v46 }
 0x742   : > { %3958 = vmatprep.subr.mxu0 %v5337_v47  ;;  %4014 = vmatprep.subr.mxu1 %v5337_v47 }
 0x743   : > { %3959 = vmatpush3.msra.mxu0 %v5337_v47  ;;  %4015 = vmatpush3.msra.mxu1 %v5337_v47 }
 0x744   : > { %3960 = vmatprep.subr.mxu0 %v5220_v50  ;;  %4016 = vmatprep.subr.mxu1 %v5220_v50 }
 0x745   : > { %3961 = vmatpush3.msra.mxu0 %v5220_v50  ;;  %4017 = vmatpush3.msra.mxu1 %v5220_v50 }
 0x746   : > { %3963 = vmatmul.mubr.f32.vlgmr.msra.gmra.mxu0 %v5337_v47  ;;  %4042 = vmatprep.subr.mxu0 %v4996_v56 }
 0x747   : > { %3965 = vmatprep.mubr.f32.mxu0 %v5331_v46  ;;  %4043 = vmatpush3.msra.mxu0 %v4996_v56 }
 0x748   : > { %4044 = vmatprep.subr.mxu0 %v5003_v6 }
 0x749   : > { %4045 = vmatpush3.msra.mxu0 %v5003_v6 }
 0x74a   : > { %3966 = vmatmul.mubr.f32.gmra.mxu0 %v5325_v51  ;;  %4046 = vmatprep.subr.mxu0 %v5006_v58 }
 0x74b   : > { %3968 = vmatprep.mubr.f32.mxu0 %v5318_v20  ;;  %4047 = vmatpush3.msra.mxu0 %v5006_v58 }
 0x74c   : > { %4048 = vmatprep.subr.mxu0 %v5012_v7 }
 0x74d   : > { %4049 = vmatpush3.msra.mxu0 %v5012_v7 }
 0x74e   : > { %3969 = vmatmul.mubr.f32.gmra.mxu0 %v5310_v14  ;;  %4050 = vmatprep.subr.mxu0 %v5020_v18 }
 0x74f   : > { %3971 = vmatprep.mubr.f32.mxu0 %v5302_v31  ;;  %4051 = vmatpush3.msra.mxu0 %v5020_v18 }
 0x750   : > { %4052 = vmatprep.subr.mxu0 %v5029_v23 }
 0x751   : > { %4053 = vmatpush3.msra.mxu0 %v5029_v23 }
 0x752   : > { %3972 = vmatmul.mubr.f32.gmra.mxu0 %v5294_v59  ;;  %4054 = vmatprep.subr.mxu0 %v5040_v10 }
 0x753   : > { %3974 = vmatprep.mubr.f32.mxu0 %v5286_v55  ;;  %4055 = vmatpush3.msra.mxu0 %v5040_v10 }
 0x754   : > { %4056 = vmatprep.subr.mxu0 %v5051_v62 }
 0x755   : > { %4057 = vmatpush3.msra.mxu0 %v5051_v62 }
 0x756   : > { %3975 = vmatmul.mubr.f32.gmra.mxu0 %v5278_v54  ;;  %4058 = vmatprep.subr.mxu0 %v5062_v27 }
 0x757   : > { %3977 = vmatprep.mubr.f32.mxu0 %v5270_v49  ;;  %4059 = vmatpush3.msra.mxu0 %v5062_v27 }
 0x758   : > { %4060 = vmatprep.subr.mxu0 %v5073_v11 }
 0x759   : > { %4061 = vmatpush3.msra.mxu0 %v5073_v11 }
 0x75a   : > { %3978 = vmatmul.mubr.f32.gmra.mxu0 %v5263_v45  ;;  %4062 = vmatprep.subr.mxu0 %v5084_v3 }
 0x75b   : > { %3980 = vmatprep.mubr.f32.mxu0 %v5256_v8  ;;  %4063 = vmatpush3.msra.mxu0 %v5084_v3 }
 0x75c   : > { %4064 = vmatprep.subr.mxu0 %v5095_v1 }
 0x75d   : > { %4065 = vmatpush3.msra.mxu0 %v5095_v1 }
 0x75e   : > { %3981 = vmatmul.mubr.f32.gmra.mxu0 %v5249_v12  ;;  %4066 = vmatprep.subr.mxu0 %v5107_v5 }
 0x75f   : > { %3983 = vmatprep.mubr.f32.mxu0 %v5242_v15  ;;  %4067 = vmatpush3.msra.mxu0 %v5107_v5 }
 0x760   : > { %4068 = vmatprep.subr.mxu0 %v5119_v37 }
 0x761   : > { %4069 = vmatpush3.msra.mxu0 %v5119_v37 }
 0x762   : > { %3984 = vmatmul.mubr.f32.gmra.mxu0 %v5239_v61  ;;  %4070 = vmatprep.subr.mxu0 %v5131_v39 }
 0x763   : > { %4071 = vmatpush3.msra.mxu0 %v5131_v39 }
 0x764   : > { %4072 = vmatprep.subr.mxu0 %v5000_v57 }
 0x765   : > { %4073 = vmatpush3.msra.mxu0 %v5000_v57 }
 0x806   : > { %v3964_v52 = vpop.f32.mrf.mxu0 }
 0x808   : > { %v2117_v22 = vpop.f32.mrf.mxu0 }
 0x809   : > { %4018 = vmatprep.mubr.f32.mxu1 %v2117_v22  ;;  %v2341_v22 = vmul.f32 3.0, %v5220_v50 }
 0x80a   : > { %v3967_v24 = vpop.f32.mrf.mxu0  ;;  %4019 = vmatmul.mubr.f32.vlgmr.msra.gmra.mxu1 %v3964_v52 }
 0x80c   : > { %v2127_v25 = vpop.f32.mrf.mxu0 }
 0x80d   : > { %4021 = vmatprep.mubr.f32.mxu1 %v2127_v25 }
 0x80e   : > { %v3970_v26 = vpop.f32.mrf.mxu0  ;;  %4022 = vmatmul.mubr.f32.gmra.mxu1 %v3967_v24 }
 0x810   : > { %v2137_v4 = vpop.f32.mrf.mxu0 }
 0x811   : > { %4024 = vmatprep.mubr.f32.mxu1 %v2137_v4 }
 0x812   : > { %v3973_v28 = vpop.f32.mrf.mxu0  ;;  %4025 = vmatmul.mubr.f32.gmra.mxu1 %v3970_v26 }
 0x814   : > { %v2147_v29 = vpop.f32.mrf.mxu0 }
 0x815   : > { %4027 = vmatprep.mubr.f32.mxu1 %v2147_v29 }
 0x816   : > { %v3976_v33 = vpop.f32.mrf.mxu0  ;;  %4028 = vmatmul.mubr.f32.gmra.mxu1 %v3973_v28 }
 0x818   : > { %v2157_v16 = vpop.f32.mrf.mxu0 }
 0x819   : > { %4030 = vmatprep.mubr.f32.mxu1 %v2157_v16 }
 0x81a   : > { %v3979_v35 = vpop.f32.mrf.mxu0  ;;  %4031 = vmatmul.mubr.f32.gmra.mxu1 %v3976_v33 }
 0x81c   : > { %v2167_v19 = vpop.f32.mrf.mxu0 }
 0x81d   : > { %4033 = vmatprep.mubr.f32.mxu1 %v2167_v19 }
 0x81e   : > { %v3982_v21 = vpop.f32.mrf.mxu0  ;;  %4034 = vmatmul.mubr.f32.gmra.mxu1 %v3979_v35 }
 0x820   : > { %v2177_v43 = vpop.f32.mrf.mxu0 }
 0x821   : > { %4036 = vmatprep.mubr.f32.mxu1 %v2177_v43 }
 0x822   : > { %v3985_v34 = vpop.f32.mrf.mxu0  ;;  %4037 = vmatmul.mubr.f32.gmra.mxu1 %v3982_v21 }
 0x824   : > { %v2187_v17 = vpop.f32.mrf.mxu0 }
 0x825   : > { %4039 = vmatprep.mubr.f32.mxu1 %v2187_v17 }
 0x826   : > { %4040 = vmatmul.mubr.f32.gmra.mxu1 %v3985_v34 }
 0x8ca   : > { %v4020_v41 = vpop.f32.mrf.mxu1 }
 0x8cc   : > { %v2262_v13 = vpop.f32.mrf.mxu1 }
 0x8cd   : > { %4074 = vmatprep.mubr.f32.mxu0 %v2262_v13 }
 0x8ce   : > { %v4023_v42 = vpop.f32.mrf.mxu1  ;;  %4075 = vmatmul.mubr.f32.vlgmr.msra.gmra.mxu0 %v4020_v41  ;;  %v2356_v41 = vmul.f32 3.0, %v5239_v61 }
 0x8d0   : > { %v2272_v40 = vpop.f32.mrf.mxu1 }
 0x8d1   : > { %4077 = vmatprep.mubr.f32.mxu0 %v2272_v40 }
 0x8d2   : > { %v4026_v48 = vpop.f32.mrf.mxu1  ;;  %4078 = vmatmul.mubr.f32.gmra.mxu0 %v4023_v42  ;;  %v2354_v42 = vmul.f32 3.0, %v5249_v12 }
 0x8d4   : > { %v2282_v32 = vpop.f32.mrf.mxu1 }
 0x8d5   : > { %4080 = vmatprep.mubr.f32.mxu0 %v2282_v32 }
 0x8d6   : > { %v4029_v30 = vpop.f32.mrf.mxu1  ;;  %4081 = vmatmul.mubr.f32.gmra.mxu0 %v4026_v48  ;;  %v2355_v48 = vmul.f32 3.0, %v5242_v15  ;;  %v2351_v15 = vmul.f32 3.0, %v5270_v49 }
 0x8d8   : > { %v2292_v60 = vpop.f32.mrf.mxu1 }
 0x8d9   : > { %4083 = vmatprep.mubr.f32.mxu0 %v2292_v60  ;;  %v2353_v60 = vmul.f32 3.0, %v5256_v8  ;;  %v2350_v8 = vmul.f32 3.0, %v5278_v54  ;;  %v2348_v54 = vmul.f32 3.0, %v5294_v59  ;;  %v2346_v59 = vmul.f32 3.0, %v5310_v14 }
 0x8da   : > { %v4032_v63 = vpop.f32.mrf.mxu1  ;;  %4084 = vmatmul.mubr.f32.gmra.mxu0 %v4029_v30  ;;  %v2344_v14 = vmul.f32 3.0, %v5325_v51  ;;  %v2342_v51 = vmul.f32 3.0, %v5337_v47 }
 0x8dc   : > { %v2302_v44 = vpop.f32.mrf.mxu1 }
 0x8dd   : > { %4086 = vmatprep.mubr.f32.mxu0 %v2302_v44 }
 0x8de   : > { %v4035_v0 = vpop.f32.mrf.mxu1  ;;  %4087 = vmatmul.mubr.f32.gmra.mxu0 %v4032_v63 }
 0x8e0   : > { %v2312_v36 = vpop.f32.mrf.mxu1 }
 0x8e1   : > { %4089 = vmatprep.mubr.f32.mxu0 %v2312_v36 }
 0x8e2   : > { %v4038_v53 = vpop.f32.mrf.mxu1  ;;  %4090 = vmatmul.mubr.f32.gmra.mxu0 %v4035_v0  ;;  %v2352_v0 = vmul.f32 3.0, %v5263_v45 }
 0x8e4   : > { %v2322_v38 = vpop.f32.mrf.mxu1 }
 0x8e5   : > { %4092 = vmatprep.mubr.f32.mxu0 %v2322_v38 }
 0x8e6   : > { %v4041_v2 = vpop.f32.mrf.mxu1  ;;  %4093 = vmatmul.mubr.f32.gmra.mxu0 %v4038_v53 }
 0x8e8   : > { %v2332_v9 = vpop.f32.mrf.mxu1 }
 0x8e9   : > { %4095 = vmatprep.mubr.f32.mxu0 %v2332_v9 }
 0x8ea   : > { %4096 = vmatmul.mubr.f32.gmra.mxu0 %v4041_v2  ;;  %v2349_v2 = vmul.f32 3.0, %v5286_v55 }
 0x98e   : > { %v5398_v52 = vpop.f32.mrf.mxu0 }
 0x990   : > { %v2423_v24 = vpop.f32.mrf.mxu0 }
 0x991   : > { %v2502_v25 = vsub.f32 %v2341_v22, %v2423_v24 }
 0x992   : > { %v5401_v26 = vpop.f32.mrf.mxu0 }
 0x993   : > { %v5403_v4 = vmul.f32 0.5, %v2502_v25  ;;  %v2347_v25 = vmul.f32 3.0, %v5302_v31 }
 0x994   : > { %v5405_v28 = vpop.f32.mrf.mxu0 }
 0x995   : > { %4130 = vmatprep.mubr.f32.mxu1 %v5403_v4 }
 0x996   : > { %v5408_v29 = vpop.f32.mrf.mxu0 }
 0x997   : > { %v2507_v31 = vsub.f32 %v2346_v59, %v5408_v29  ;;  %v2343_v29 = vmul.f32 3.0, %v5331_v46  ;;  %v2503_v46 = vsub.f32 %v2342_v51, %v5398_v52 }
 0x998   : > { %v5410_v33 = vpop.f32.mrf.mxu0 }
 0x999   : > { %v5518_v52 = vmul.f32 0.5, %v2503_v46 }
 0x99a   : > { %v5412_v16 = vpop.f32.mrf.mxu0 }
 0x99b   : > { %v2509_v55 = vsub.f32 %v2348_v54, %v5412_v16  ;;  %v2345_v16 = vmul.f32 3.0, %v5318_v20  ;;  %v2505_v20 = vsub.f32 %v2344_v14, %v5401_v26 }
 0x99c   : > { %v5414_v35 = vpop.f32.mrf.mxu0 }
 0x99d   : > { %v5506_v26 = vmul.f32 0.5, %v2505_v20 }
 0x99e   : > { %v4088_v19 = vpop.f32.mrf.mxu0 }
 0x99f   : > { %v2511_v49 = vsub.f32 %v2350_v8, %v4088_v19 }
 0x9a0   : > { %v2463_v50 = vpop.f32.mrf.mxu0 }
 0x9a1   : > { %v2510_v22 = vsub.f32 %v2349_v2, %v2463_v50  ;;  %v5459_v19 = vmul.f32 0.5, %v2511_v49  ;;  %v2508_v50 = vsub.f32 %v2347_v25, %v5414_v35  ;;  %v2506_v35 = vsub.f32 %v2345_v16, %v5410_v33 }
 0x9a2   : > { %v4091_v21 = vpop.f32.mrf.mxu0  ;;  %v2504_v33 = vsub.f32 %v2343_v29, %v5405_v28  ;;  %v2825_v2 = vmul.f32 3.0, %v5518_v52  ;;  %v5582_v16 = vstv %s4273_s29 }
 0x9a3   : > { %v2513_v61 = vsub.f32 %v2352_v0, %v4091_v21  ;;  %v5467_v21 = vmul.f32 0.5, %v2510_v22 }
 0x9a4   : > { %v2473_v43 = vpop.f32.mrf.mxu0  ;;  %v5512_v47 = vmul.f32 0.5, %v2504_v33 }
 0x9a5   : > { %v2512_v45 = vsub.f32 %v2351_v15, %v2473_v43  ;;  %v5444_v9 = vmul.f32 0.5, %v2513_v61  ;;  %v5475_v43 = vmul.f32 0.5, %v2509_v55  ;;  %v2824_v55 = vmul.f32 3.0, %v5403_v4 }
 0x9a6   : > { %v4094_v34 = vpop.f32.mrf.mxu0  ;;  %v2826_v51 = vmul.f32 3.0, %v5512_v47 }
 0x9a7   : > { %v2515_v30 = vsub.f32 %v2354_v42, %v4094_v34  ;;  %v5451_v24 = vmul.f32 0.5, %v2512_v45  ;;  %v5483_v34 = vmul.f32 0.5, %v2508_v50 }
 0x9a8   : > { %v2483_v17 = vpop.f32.mrf.mxu0 }
 0x9a9   : > { %v2514_v36 = vsub.f32 %v2353_v60, %v2483_v17  ;;  %v5430_v12 = vmul.f32 0.5, %v2515_v30  ;;  %v5491_v17 = vmul.f32 0.5, %v2507_v31  ;;  %v2827_v31 = vmul.f32 3.0, %v5506_v26 }
 0x9aa   : > { %v4097_v13 = vpop.f32.mrf.mxu0 }
 0x9ab   : > { %v2517_v40 = vsub.f32 %v2356_v41, %v4097_v13  ;;  %v5437_v38 = vmul.f32 0.5, %v2514_v36  ;;  %v5499_v41 = vmul.f32 0.5, %v2506_v35 }
 0x9ac   : > { %v2493_v32 = vpop.f32.mrf.mxu0 }
 0x9ad   : > { %v5420_v63 = vmul.f32 0.5, %v2517_v40  ;;  %v2516_v44 = vsub.f32 %v2355_v48, %v2493_v32 }
 0x9af   : > { %v5423_v53 = vmul.f32 0.5, %v2516_v44  ;;  %4098 = vmatprep.subr.mxu1 %v5420_v63  ;;  %4154 = vmatprep.subr.mxu0 %v5420_v63 }
 0x9b0   : > { %4099 = vmatpush3.msra.mxu1 %v5420_v63  ;;  %4155 = vmatpush3.msra.mxu0 %v5420_v63 }
 0x9b1   : > { %4100 = vmatprep.subr.mxu1 %v5423_v53  ;;  %4156 = vmatprep.subr.mxu0 %v5423_v53 }
 0x9b2   : > { %4101 = vmatpush3.msra.mxu1 %v5423_v53  ;;  %4157 = vmatpush3.msra.mxu0 %v5423_v53 }
 0x9b3   : > { %4102 = vmatprep.subr.mxu1 %v5430_v12  ;;  %4158 = vmatprep.subr.mxu0 %v5430_v12 }
 0x9b4   : > { %4103 = vmatpush3.msra.mxu1 %v5430_v12  ;;  %4159 = vmatpush3.msra.mxu0 %v5430_v12 }
 0x9b5   : > { %4104 = vmatprep.subr.mxu1 %v5437_v38  ;;  %4160 = vmatprep.subr.mxu0 %v5437_v38 }
 0x9b6   : > { %4105 = vmatpush3.msra.mxu1 %v5437_v38  ;;  %4161 = vmatpush3.msra.mxu0 %v5437_v38 }
 0x9b7   : > { %4106 = vmatprep.subr.mxu1 %v5444_v9  ;;  %4162 = vmatprep.subr.mxu0 %v5444_v9 }
 0x9b8   : > { %4107 = vmatpush3.msra.mxu1 %v5444_v9  ;;  %4163 = vmatpush3.msra.mxu0 %v5444_v9 }
 0x9b9   : > { %4108 = vmatprep.subr.mxu1 %v5451_v24  ;;  %4164 = vmatprep.subr.mxu0 %v5451_v24 }
 0x9ba   : > { %4109 = vmatpush3.msra.mxu1 %v5451_v24  ;;  %4165 = vmatpush3.msra.mxu0 %v5451_v24 }
 0x9bb   : > { %4110 = vmatprep.subr.mxu1 %v5459_v19  ;;  %4166 = vmatprep.subr.mxu0 %v5459_v19 }
 0x9bc   : > { %4111 = vmatpush3.msra.mxu1 %v5459_v19  ;;  %4167 = vmatpush3.msra.mxu0 %v5459_v19 }
 0x9bd   : > { %4112 = vmatprep.subr.mxu1 %v5467_v21  ;;  %4168 = vmatprep.subr.mxu0 %v5467_v21 }
 0x9be   : > { %4113 = vmatpush3.msra.mxu1 %v5467_v21  ;;  %4169 = vmatpush3.msra.mxu0 %v5467_v21 }
 0x9bf   : > { %4114 = vmatprep.subr.mxu1 %v5475_v43  ;;  %4170 = vmatprep.subr.mxu0 %v5475_v43 }
 0x9c0   : > { %4115 = vmatpush3.msra.mxu1 %v5475_v43  ;;  %4171 = vmatpush3.msra.mxu0 %v5475_v43 }
 0x9c1   : > { %4116 = vmatprep.subr.mxu1 %v5483_v34  ;;  %4172 = vmatprep.subr.mxu0 %v5483_v34 }
 0x9c2   : > { %4117 = vmatpush3.msra.mxu1 %v5483_v34  ;;  %4173 = vmatpush3.msra.mxu0 %v5483_v34 }
 0x9c3   : > { %4118 = vmatprep.subr.mxu1 %v5491_v17  ;;  %4174 = vmatprep.subr.mxu0 %v5491_v17 }
 0x9c4   : > { %4119 = vmatpush3.msra.mxu1 %v5491_v17  ;;  %4175 = vmatpush3.msra.mxu0 %v5491_v17 }
 0x9c5   : > { %4120 = vmatprep.subr.mxu1 %v5499_v41  ;;  %4176 = vmatprep.subr.mxu0 %v5499_v41 }
 0x9c6   : > { %4121 = vmatpush3.msra.mxu1 %v5499_v41  ;;  %4177 = vmatpush3.msra.mxu0 %v5499_v41 }
 0x9c7   : > { %4122 = vmatprep.subr.mxu1 %v5506_v26  ;;  %4178 = vmatprep.subr.mxu0 %v5506_v26 }
 0x9c8   : > { %4123 = vmatpush3.msra.mxu1 %v5506_v26  ;;  %4179 = vmatpush3.msra.mxu0 %v5506_v26 }
 0x9c9   : > { %4124 = vmatprep.subr.mxu1 %v5512_v47  ;;  %4180 = vmatprep.subr.mxu0 %v5512_v47 }
 0x9ca   : > { %4125 = vmatpush3.msra.mxu1 %v5512_v47  ;;  %4181 = vmatpush3.msra.mxu0 %v5512_v47 }
 0x9cb   : > { %4126 = vmatprep.subr.mxu1 %v5518_v52  ;;  %4182 = vmatprep.subr.mxu0 %v5518_v52 }
 0x9cc   : > { %4127 = vmatpush3.msra.mxu1 %v5518_v52  ;;  %4183 = vmatpush3.msra.mxu0 %v5518_v52 }
 0x9cd   : > { %4128 = vmatprep.subr.mxu1 %v5403_v4  ;;  %4184 = vmatprep.subr.mxu0 %v5403_v4 }
 0x9ce   : > { %4129 = vmatpush3.msra.mxu1 %v5403_v4  ;;  %4185 = vmatpush3.msra.mxu0 %v5403_v4 }
 0x9cf   : > { %4131 = vmatmul.mubr.f32.vlgmr.msra.gmra.mxu1 %v5518_v52  ;;  %4210 = vmatprep.subr.mxu1 %v4996_v56 }
 0x9d0   : > { %4133 = vmatprep.mubr.f32.mxu1 %v5512_v47  ;;  %4211 = vmatpush3.msra.mxu1 %v4996_v56 }
 0x9d1   : > { %4212 = vmatprep.subr.mxu1 %v5003_v6 }
 0x9d2   : > { %4213 = vmatpush3.msra.mxu1 %v5003_v6 }
 0x9d3   : > { %4134 = vmatmul.mubr.f32.gmra.mxu1 %v5506_v26  ;;  %4214 = vmatprep.subr.mxu1 %v5006_v58 }
 0x9d4   : > { %4136 = vmatprep.mubr.f32.mxu1 %v5499_v41  ;;  %4215 = vmatpush3.msra.mxu1 %v5006_v58 }
 0x9d5   : > { %4216 = vmatprep.subr.mxu1 %v5012_v7 }
 0x9d6   : > { %4217 = vmatpush3.msra.mxu1 %v5012_v7 }
 0x9d7   : > { %4137 = vmatmul.mubr.f32.gmra.mxu1 %v5491_v17  ;;  %4218 = vmatprep.subr.mxu1 %v5020_v18 }
 0x9d8   : > { %4139 = vmatprep.mubr.f32.mxu1 %v5483_v34  ;;  %4219 = vmatpush3.msra.mxu1 %v5020_v18 }
 0x9d9   : > { %4220 = vmatprep.subr.mxu1 %v5029_v23 }
 0x9da   : > { %4221 = vmatpush3.msra.mxu1 %v5029_v23 }
 0x9db   : > { %4140 = vmatmul.mubr.f32.gmra.mxu1 %v5475_v43  ;;  %4222 = vmatprep.subr.mxu1 %v5040_v10 }
 0x9dc   : > { %4142 = vmatprep.mubr.f32.mxu1 %v5467_v21  ;;  %4223 = vmatpush3.msra.mxu1 %v5040_v10 }
 0x9dd   : > { %4224 = vmatprep.subr.mxu1 %v5051_v62 }
 0x9de   : > { %4225 = vmatpush3.msra.mxu1 %v5051_v62 }
 0x9df   : > { %4143 = vmatmul.mubr.f32.gmra.mxu1 %v5459_v19  ;;  %4226 = vmatprep.subr.mxu1 %v5062_v27 }
 0x9e0   : > { %4145 = vmatprep.mubr.f32.mxu1 %v5451_v24  ;;  %4227 = vmatpush3.msra.mxu1 %v5062_v27 }
 0x9e1   : > { %4228 = vmatprep.subr.mxu1 %v5073_v11 }
 0x9e2   : > { %4229 = vmatpush3.msra.mxu1 %v5073_v11 }
 0x9e3   : > { %4146 = vmatmul.mubr.f32.gmra.mxu1 %v5444_v9  ;;  %4230 = vmatprep.subr.mxu1 %v5084_v3 }
 0x9e4   : > { %4148 = vmatprep.mubr.f32.mxu1 %v5437_v38  ;;  %4231 = vmatpush3.msra.mxu1 %v5084_v3 }
 0x9e5   : > { %4232 = vmatprep.subr.mxu1 %v5095_v1 }
 0x9e6   : > { %4233 = vmatpush3.msra.mxu1 %v5095_v1 }
 0x9e7   : > { %4149 = vmatmul.mubr.f32.gmra.mxu1 %v5430_v12  ;;  %4234 = vmatprep.subr.mxu1 %v5107_v5 }
 0x9e8   : > { %4151 = vmatprep.mubr.f32.mxu1 %v5423_v53  ;;  %4235 = vmatpush3.msra.mxu1 %v5107_v5 }
 0x9e9   : > { %4236 = vmatprep.subr.mxu1 %v5119_v37 }
 0x9ea   : > { %4237 = vmatpush3.msra.mxu1 %v5119_v37 }
 0x9eb   : > { %4152 = vmatmul.mubr.f32.gmra.mxu1 %v5420_v63  ;;  %4238 = vmatprep.subr.mxu1 %v5131_v39 }
 0x9ec   : > { %4239 = vmatpush3.msra.mxu1 %v5131_v39 }
 0x9ed   : > { %4240 = vmatprep.subr.mxu1 %v5000_v57 }
 0x9ee   : > { %4241 = vmatpush3.msra.mxu1 %v5000_v57 }
 0xa8f   : > { %v4132_v56 = vpop.f32.mrf.mxu1 }
 0xa91   : > { %v2600_v6 = vpop.f32.mrf.mxu1 }
 0xa92   : > { %4186 = vmatprep.mubr.f32.mxu0 %v2600_v6 }
 0xa93   : > { %v4135_v58 = vpop.f32.mrf.mxu1  ;;  %4187 = vmatmul.mubr.f32.vlgmr.msra.gmra.mxu0 %v4132_v56  ;;  %v2829_v56 = vmul.f32 3.0, %v5491_v17 }
 0xa95   : > { %v2610_v7 = vpop.f32.mrf.mxu1 }
 0xa96   : > { %4189 = vmatprep.mubr.f32.mxu0 %v2610_v7 }
 0xa97   : > { %v4138_v18 = vpop.f32.mrf.mxu1  ;;  %4190 = vmatmul.mubr.f32.gmra.mxu0 %v4135_v58 }
 0xa99   : > { %v2620_v23 = vpop.f32.mrf.mxu1 }
 0xa9a   : > { %4192 = vmatprep.mubr.f32.mxu0 %v2620_v23 }
 0xa9b   : > { %v4141_v10 = vpop.f32.mrf.mxu1  ;;  %4193 = vmatmul.mubr.f32.gmra.mxu0 %v4138_v18  ;;  %v2828_v18 = vmul.f32 3.0, %v5499_v41 }
 0xa9d   : > { %v2630_v62 = vpop.f32.mrf.mxu1 }
 0xa9e   : > { %4195 = vmatprep.mubr.f32.mxu0 %v2630_v62 }
 0xa9f   : > { %v4144_v27 = vpop.f32.mrf.mxu1  ;;  %4196 = vmatmul.mubr.f32.gmra.mxu0 %v4141_v10 }
 0xaa1   : > { %v2640_v11 = vpop.f32.mrf.mxu1 }
 0xaa2   : > { %4198 = vmatprep.mubr.f32.mxu0 %v2640_v11 }
 0xaa3   : > { %v4147_v57 = vpop.f32.mrf.mxu1  ;;  %4199 = vmatmul.mubr.f32.gmra.mxu0 %v4144_v27  ;;  %v2831_v27 = vmul.f32 3.0, %v5475_v43 }
 0xaa5   : > { %v2650_v3 = vpop.f32.mrf.mxu1 }
 0xaa6   : > { %4201 = vmatprep.mubr.f32.mxu0 %v2650_v3 }
 0xaa7   : > { %v4150_v1 = vpop.f32.mrf.mxu1  ;;  %4202 = vmatmul.mubr.f32.gmra.mxu0 %v4147_v57 }
 0xaa9   : > { %v2660_v5 = vpop.f32.mrf.mxu1 }
 0xaaa   : > { %4204 = vmatprep.mubr.f32.mxu0 %v2660_v5 }
 0xaab   : > { %v4153_v37 = vpop.f32.mrf.mxu1  ;;  %4205 = vmatmul.mubr.f32.gmra.mxu0 %v4150_v1  ;;  %v2830_v1 = vmul.f32 3.0, %v5483_v34 }
 0xaad   : > { %v2670_v39 = vpop.f32.mrf.mxu1 }
 0xaae   : > { %4207 = vmatprep.mubr.f32.mxu0 %v2670_v39 }
 0xaaf   : > { %4208 = vmatmul.mubr.f32.gmra.mxu0 %v4153_v37 }
 0xb53   : > { %v4188_v28 = vpop.f32.mrf.mxu0 }
 0xb55   : > { %v2745_v13 = vpop.f32.mrf.mxu0 }
 0xb56   : > { %4242 = vmatprep.mubr.f32.mxu1 %v2745_v13 }
 0xb57   : > { %v4191_v42 = vpop.f32.mrf.mxu0  ;;  %4243 = vmatmul.mubr.f32.vlgmr.msra.gmra.mxu1 %v4188_v28  ;;  %v2833_v28 = vmul.f32 3.0, %v5459_v19 }
 0xb59   : > { %v2755_v40 = vpop.f32.mrf.mxu0 }
 0xb5a   : > { %4245 = vmatprep.mubr.f32.mxu1 %v2755_v40 }
 0xb5b   : > { %v4194_v48 = vpop.f32.mrf.mxu0  ;;  %4246 = vmatmul.mubr.f32.gmra.mxu1 %v4191_v42 }
 0xb5d   : > { %v2765_v32 = vpop.f32.mrf.mxu0 }
 0xb5e   : > { %4248 = vmatprep.mubr.f32.mxu1 %v2765_v32 }
 0xb5f   : > { %v4197_v30 = vpop.f32.mrf.mxu0  ;;  %4249 = vmatmul.mubr.f32.gmra.mxu1 %v4194_v48  ;;  %v2832_v48 = vmul.f32 3.0, %v5467_v21 }
 0xb61   : > { %v2775_v60 = vpop.f32.mrf.mxu0 }
 0xb62   : > { %4251 = vmatprep.mubr.f32.mxu1 %v2775_v60 }
 0xb63   : > { %v4200_v44 = vpop.f32.mrf.mxu0  ;;  %4252 = vmatmul.mubr.f32.gmra.mxu1 %v4197_v30 }
 0xb65   : > { %v2785_v0 = vpop.f32.mrf.mxu0 }
 0xb66   : > { %4254 = vmatprep.mubr.f32.mxu1 %v2785_v0 }
 0xb67   : > { %v4203_v36 = vpop.f32.mrf.mxu0  ;;  %4255 = vmatmul.mubr.f32.gmra.mxu1 %v4200_v44  ;;  %v2835_v44 = vmul.f32 3.0, %v5444_v9 }
 0xb69   : > { %v2795_v61 = vpop.f32.mrf.mxu0 }
 0xb6a   : > { %4257 = vmatprep.mubr.f32.mxu1 %v2795_v61 }
 0xb6b   : > { %v4206_v15 = vpop.f32.mrf.mxu0  ;;  %4258 = vmatmul.mubr.f32.gmra.mxu1 %v4203_v36 }
 0xb6d   : > { %v2805_v8 = vpop.f32.mrf.mxu0 }
 0xb6e   : > { %4260 = vmatprep.mubr.f32.mxu1 %v2805_v8 }
 0xb6f   : > { %v4209_v45 = vpop.f32.mrf.mxu0  ;;  %4261 = vmatmul.mubr.f32.gmra.mxu1 %v4206_v15  ;;  %v2834_v15 = vmul.f32 3.0, %v5451_v24 }
 0xb71   : > { %v2815_v49 = vpop.f32.mrf.mxu0 }
 0xb72   : > { %4263 = vmatprep.mubr.f32.mxu1 %v2815_v49 }
 0xb73   : > { %4264 = vmatmul.mubr.f32.gmra.mxu1 %v4209_v45 }
 0xc17   : > { %v4244_v54 = vpop.f32.mrf.mxu1 }
 0xc18   : > { %v2986_v22 = vsub.f32 %v2825_v2, %v4244_v54  ;;  %v2837_v2 = vmul.f32 3.0, %v5430_v12 }
 0xc19   : > { %v2906_v25 = vpop.f32.mrf.mxu1 }
 0xc1a   : > { %v3002_v59 = vmul.f32 0.5, %v2986_v22  ;;  %v2985_v50 = vsub.f32 %v2824_v55, %v2906_v25  ;;  %v2836_v25 = vmul.f32 3.0, %v5437_v38 }
 0xc1b   : > { %v4247_v14 = vpop.f32.mrf.mxu1 }
 0xc1c   : > { %v3022_v35 = vmul.f32 %v5582_v16, %v3002_v59  ;;  %v3001_v20 = vmul.f32 0.5, %v2985_v50  ;;  %v2988_v29 = vsub.f32 %v2827_v31, %v4247_v14  ;;  %v2839_v14 = vmul.f32 3.0, %v5420_v63 }
 0xc1d   : > { %v2916_v33 = vpop.f32.mrf.mxu1 }
 0xc1e   : > { %3038 = vst [vmem:[%s4810_s7 + $0x8] sm:$0xff] %v3022_v35  ;;  %v3021_v4 = vmul.f32 %v5582_v16, %v3001_v20  ;;  %v3004_v46 = vmul.f32 0.5, %v2988_v29  ;;  %v2987_v52 = vsub.f32 %v2826_v51, %v2916_v33  ;;  %v2838_v51 = vmul.f32 3.0, %v5423_v53 }
 0xc1f   : > { %v4250_v26 = vpop.f32.mrf.mxu1 }
 0xc20   : > { %3037 = vst [vmem:[%s4810_s7] sm:$0xff] %v3021_v4  ;;  %v3024_v6 = vmul.f32 %v5582_v16, %v3004_v46  ;;  %v3003_v58 = vmul.f32 0.5, %v2987_v52  ;;  %v2990_v7 = vsub.f32 %v2829_v56, %v4250_v26 }
 0xc21   : > { %v2926_v23 = vpop.f32.mrf.mxu1 }
 0xc22   : > { %3040 = vst [vmem:[%s4810_s7 + $0x18] sm:$0xff] %v3024_v6  ;;  %v3023_v47 = vmul.f32 %v5582_v16, %v3003_v58  ;;  %v3006_v10 = vmul.f32 0.5, %v2990_v7  ;;  %v2989_v62 = vsub.f32 %v2828_v18, %v2926_v23 }
 0xc23   : > { %v4253_v11 = vpop.f32.mrf.mxu1 }
 0xc24   : > { %3039 = vst [vmem:[%s4810_s7 + $0x10] sm:$0xff] %v3023_v47  ;;  %v3026_v17 = vmul.f32 %v5582_v16, %v3006_v10  ;;  %v3005_v57 = vmul.f32 0.5, %v2989_v62  ;;  %v2992_v3 = vsub.f32 %v2831_v27, %v4253_v11 }
 0xc25   : > { %v2936_v5 = vpop.f32.mrf.mxu1 }
 0xc26   : > { %3042 = vst [vmem:[%s4810_s7 + $0x28] sm:$0xff] %v3026_v17  ;;  %v3025_v41 = vmul.f32 %v5582_v16, %v3005_v57  ;;  %v3008_v37 = vmul.f32 0.5, %v2992_v3  ;;  %v2991_v39 = vsub.f32 %v2830_v1, %v2936_v5 }
 0xc27   : > { %v4256_v13 = vpop.f32.mrf.mxu1 }
 0xc28   : > { %3041 = vst [vmem:[%s4810_s7 + $0x20] sm:$0xff] %v3025_v41  ;;  %v3028_v43 = vmul.f32 %v5582_v16, %v3008_v37  ;;  %v3007_v42 = vmul.f32 0.5, %v2991_v39  ;;  %v2994_v40 = vsub.f32 %v2833_v28, %v4256_v13 }
 0xc29   : > { %v2946_v32 = vpop.f32.mrf.mxu1 }
 0xc2a   : > { %3044 = vst [vmem:[%s4810_s7 + $0x38] sm:$0xff] %v3028_v43  ;;  %v3027_v34 = vmul.f32 %v5582_v16, %v3007_v42  ;;  %v3010_v30 = vmul.f32 0.5, %v2994_v40  ;;  %v2993_v60 = vsub.f32 %v2832_v48, %v2946_v32 }
 0xc2b   : > { %v4259_v0 = vpop.f32.mrf.mxu1 }
 0xc2c   : > { %3043 = vst [vmem:[%s4810_s7 + $0x30] sm:$0xff] %v3027_v34  ;;  %v3030_v19 = vmul.f32 %v5582_v16, %v3010_v30  ;;  %v3009_v36 = vmul.f32 0.5, %v2993_v60  ;;  %v2996_v61 = vsub.f32 %v2835_v44, %v4259_v0 }
 0xc2d   : > { %v2956_v8 = vpop.f32.mrf.mxu1 }
 0xc2e   : > { %3046 = vst [vmem:[%s4810_s7 + $0x48] sm:$0xff] %v3030_v19  ;;  %v3029_v21 = vmul.f32 %v5582_v16, %v3009_v36  ;;  %v3012_v45 = vmul.f32 0.5, %v2996_v61  ;;  %v2995_v49 = vsub.f32 %v2834_v15, %v2956_v8 }
 0xc2f   : > { %v4262_v54 = vpop.f32.mrf.mxu1 }
 0xc30   : > { %3045 = vst [vmem:[%s4810_s7 + $0x40] sm:$0xff] %v3029_v21  ;;  %v3032_v9 = vmul.f32 %v5582_v16, %v3012_v45  ;;  %v3011_v22 = vmul.f32 0.5, %v2995_v49  ;;  %v2998_v55 = vsub.f32 %v2837_v2, %v4262_v54 }
 0xc31   : > { %v2966_v59 = vpop.f32.mrf.mxu1 }
 0xc32   : > { %3048 = vst [vmem:[%s4810_s7 + $0x58] sm:$0xff] %v3032_v9  ;;  %v3031_v24 = vmul.f32 %v5582_v16, %v3011_v22  ;;  %v3014_v50 = vmul.f32 0.5, %v2998_v55  ;;  %v2997_v31 = vsub.f32 %v2836_v25, %v2966_v59 }
 0xc33   : > { %v4265_v12 = vpop.f32.mrf.mxu1 }
 0xc34   : > { %3047 = vst [vmem:[%s4810_s7 + $0x50] sm:$0xff] %v3031_v24  ;;  %v3034_v35 = vmul.f32 %v5582_v16, %v3014_v50  ;;  %v3013_v20 = vmul.f32 0.5, %v2997_v31  ;;  %v3000_v29 = vsub.f32 %v2839_v14, %v4265_v12 }
 0xc35   : > { %v2976_v38 = vpop.f32.mrf.mxu1 }
 0xc36   : > { %3050 = vst [vmem:[%s4810_s7 + $0x68] sm:$0xff] %v3034_v35  ;;  %v3033_v33 = vmul.f32 %v5582_v16, %v3013_v20  ;;  %v3016_v4 = vmul.f32 0.5, %v3000_v29  ;;  %v2999_v46 = vsub.f32 %v2838_v51, %v2976_v38 }
 0xc38   : > { %3049 = vst [vmem:[%s4810_s7 + $0x60] sm:$0xff] %v3033_v33  ;;  %v3036_v52 = vmul.f32 %v5582_v16, %v3016_v4  ;;  %v3015_v56 = vmul.f32 0.5, %v2999_v46 }
 0xc3a   : > { %3052 = vst [vmem:[%s4810_s7 + $0x78] sm:$0xff] %v3036_v52  ;;  %v3035_v63 = vmul.f32 %v5582_v16, %v3015_v56 }
 0xc3c   : > { %3051 = vst [vmem:[%s4810_s7 + $0x70] sm:$0xff] %v3035_v63 }
 0xc3d PF: > { %s5755_s14 = sld [smem:[#allocation17_spill]]  ;;  %s3072_s9 = sshll.u32 %s4810_s7, 4  ;;  %s5636_s9 = int_to_ptr.vmem [resolvable:$true] %s3072_s9 }
 0xc3e   : > { %s5756_s27 = sld [smem:[#allocation18_spill]]  ;;  %s3055_s10 = scalar_lea.sflag [#allocation6], %s4807_s4 }
 0xc3f   : > { %s5757_s12 = sld [smem:[#allocation24_spill]]  ;;  %s4457_s13 = scalar_lea.vmem %s5636_s9, 2048 }
 0xc40   : > { %p4458_p3 = scmp.ne.s32.totalorder %s5636_s9, %s4457_s13  ;;  %s4619_s8 = smov [#allocation9]  }
 0xc41   : > { %s4461_s22 = sshll.u32 %s4619_s8, 4  ;;  %s4462_s22 = int_to_ptr.vmem [resolvable:$false] %s4461_s22 }
 0xc42   : > { %s4463_s28 = scalar_lea.vmem %s4462_s22, 4096  ;;  %p4464_p6 = scmp.lt.s32.totalorder %s5636_s9, %s4462_s22 }
 0xc43   : > { %s3298_s15 = sshll.u32 %s5755_s14, 11  ;;  %p4465_p8 = scmp.lt.s32.totalorder %s4463_s28, %s4457_s13 }
 0xc44   : > { %p5758_p2 = scmp.ne.s32.totalorder %s5756_s27, 0 }
 0xc45   : > { %s5633_s5 = scalar_lea.hbm %s5757_s12, %s3298_s15  ;;  %p4466_p7 = por %p4465_p8, %p4464_p6 }
 0xc46   : > { %p4459_p4 = pnand %p4458_p3, %p5758_p2 }
 0xc48   : > { %p4460_p5 = pneg %p4459_p4 }
 0xc4a   : > { %p4467_p9 = pnand %p4466_p7, %p4460_p5 }
 0xc4c   : > { %4470 = shalt.err (!%p4467_p9)
}
 0xc4d   : > { %s4471_s7 = scalar_lea.hbm %s5633_s5, 2048  ;;  %s4475_s29 = scalar_lea.hbm %s5757_s12, 4096 }
 0xc4e   : > { %p4472_p10 = scmp.ne.s32.totalorder %s5633_s5, %s4471_s7  ;;  %p4476_p13 = scmp.lt.s32.totalorder %s5633_s5, %s5757_s12 }
 0xc4f   : > { %p4477_p11 = scmp.lt.s32.totalorder %s4475_s29, %s4471_s7 }
 0xc50   : > { %p4473_p12 = pnand %p4472_p10, %p5758_p2 }
 0xc51   : > { %p4478_p1 = por %p4477_p11, %p4476_p13 }
 0xc52   : > { %p4474_p0 = pneg %p4473_p12 }
 0xc54   : > { %p4479_p3 = pnand %p4478_p1, %p4474_p0 }
 0xc56   : > { %4482 = shalt.err (!%p4479_p3)
}
 0xc57   : > { %s4620_s6 = smov 128   ;;  %s4621_s13 = smov 8  }
 0xc58   : > { %4280 = dma.vmem_to_hbm [thread:$0]  (%p5758_p2), %s5636_s9, 2048, %s5633_s5, %s3055_s10, %s4620_s6, %s4620_s6, %s4621_s13  }
 0xc59   : > { %s3295_s8 = sshll.u32 %s5755_s14, 4  ;;  %s3088_s22 = sshll.u32 %s256_s11, 4  ;;  %s3089_s22 = int_to_ptr.vmem [resolvable:$true] %s3088_s22 }
 0xc5a   : > { %s5759_s30 = sld [smem:[#allocation25_spill]]  ;;  %s3060_s29 = scalar_lea.sflag [#allocation11], %s4807_s4 }
 0xc5b   : > { %s4483_s15 = scalar_lea.vmem %s3089_s22, 16  ;;  %s4622_s3 = smov [#allocation10]  }
 0xc5c   : > { %p4484_p4 = scmp.ne.s32.totalorder %s3089_s22, %s4483_s15  ;;  %s4487_s0 = sshll.u32 %s4622_s3, 4  ;;  %s4488_s0 = int_to_ptr.vmem [resolvable:$false] %s4487_s0 }
 0xc5d   : > { %s4489_s1 = scalar_lea.vmem %s4488_s0, 32  ;;  %p4490_p8 = scmp.lt.s32.totalorder %s3089_s22, %s4488_s0 }
 0xc5e   : > { %p4485_p5 = pnand %p4484_p4, %p5758_p2  ;;  %p4491_p7 = scmp.lt.s32.totalorder %s4489_s1, %s4483_s15 }
 0xc60   : > { %s3086_s21 = scalar_lea.hbm %s5759_s30, %s3295_s8  ;;  %p4486_p6 = pneg %p4485_p5 }
 0xc61   : > { %p4492_p9 = por %p4491_p7, %p4490_p8 }
 0xc63   : > { %p4493_p10 = pnand %p4492_p9, %p4486_p6 }
 0xc65   : > { %4496 = shalt.err (!%p4493_p10)
}
 0xc66   : > { %s4497_s11 = scalar_lea.hbm %s3086_s21, 16  ;;  %s4501_s5 = scalar_lea.hbm %s5759_s30, 32 }
 0xc67   : > { %p4498_p12 = scmp.ne.s32.totalorder %s3086_s21, %s4497_s11  ;;  %p4502_p11 = scmp.lt.s32.totalorder %s3086_s21, %s5759_s30 }
 0xc68   : > { %p4503_p1 = scmp.lt.s32.totalorder %s4501_s5, %s4497_s11 }
 0xc69   : > { %p4499_p0 = pnand %p4498_p12, %p5758_p2 }
 0xc6a   : > { %p4504_p3 = por %p4503_p1, %p4502_p11 }
 0xc6b   : > { %p4500_p13 = pneg %p4499_p0 }
 0xc6d   : > { %p4505_p4 = pnand %p4504_p3, %p4500_p13 }
 0xc6f   : > { %4508 = shalt.err (!%p4505_p4)
}
 0xc70   : > { %4281 = dma.vmem_to_hbm [thread:$0]  (%p5758_p2), %s3089_s22, 16, %s3086_s21, %s3060_s29  }
 0xc71 PF: > { %s5760_s0 = sld [smem:[#allocation16_spill]]  ;;  %p4302_p5 = scmp.ge.s32.totalorder %s4611_s25, 2 }
 0xc72   : > { %s5761_s1 = sld [smem:[#allocation19_spill]] }
 0xc77   : > { %s3100_s6 = sand.u32 1, %s5760_s0  }
 0xc78   : > { %p5762_p6 = scmp.ne.s32.totalorder %s5761_s1, 0  ;;  %s3101_s13 = scalar_lea.sflag [#allocation6], %s3100_s6 }
 0xc7a   : > { %p4293_p8 = pnand %p4302_p5, %p5762_p6 }
 0xc7c   : > { %p4294_p7 = pneg %p4293_p8 }
 0xc7e   : > { %4562 = dma.done.wait (%p4294_p7), %s3101_s13, 2048  }
 0xc7f   : > { %4564 = vsyncadd (%p4294_p7), %s3101_s13, 4294965248  ;;  %s3110_s8 = scalar_lea.sflag [#allocation11], %s3100_s6 }
 0xc80   : > { %4566 = dma.done.wait (%p4294_p7), %s3110_s8, 16  }
 0xc81   : > { %4568 = vsyncadd (%p4294_p7), %s3110_s8, 4294967280  ;;  %s25_s25 = sadd.s32 1, %s4611_s25   ;;  %s5763_s27 = smov %s4771_s18 }
 0xc82   : > { %p22_p9 = scmp.ge.s32.totalorder %s25_s25, 10   ;;  %s5764_s28 = sld [smem:[#allocation20_spill]] }
 0xc83   : > { %s5765_s15 = smov %s4575_s16  ;;  %s5766_s16 = smov %s4579_s17 }
 0xc84   : > { %s5767_s17 = smov %s4768_s2  ;;  %s5768_s18 = smov %s4587_s19 }
 0xc85   : > { %s5769_s19 = smov %s4591_s20  ;;  %s5770_s20 = smov %s5763_s27 }
 0xc86   : > { %s5771_s21 = smov %s4603_s23  ;;  %s5772_s22 = smov %s4607_s24 }
 0xc87   : > { %s5774_s24 = smov %s5780_s26  ;;  %24 = sbr.rel (!%p22_p9) target bundleno = 18 (0x12), region = 106 }
 0xc88   : > { %s5773_s23 = smov %s5764_s28 }
 0xc8c   :  { %3114 = vsyncpa [#allocation5], 1 }
 0xc8d   :  { %3116 = vsyncpa [#allocation5 + $0x1], 1 }
 0xc8e   :  { %3117 = vsyncpa [#allocation8], 1 }
 0xc8f   :  { %3118 = vsyncpa [#allocation6], 1 }
 0xc90   :  { %3120 = vsyncpa [#allocation6 + $0x1], 1 }
 0xc91   :  { %3121 = vsyncpa [#allocation11], 1 }
 0xc92   :  { %3123 = vsyncpa [#allocation11 + $0x1], 1 }

</bundles_post_ra>
